<compile_context>
chip_gen: v5e
topology: v5e:2x2
jax: 0.10.0
libtpu: 0.0.40
codegen_flags: <defaults>
</compile_context>

<pallas_src>
import functools
import math

import jax
import jax.numpy as jnp
from jax.experimental import pallas as pl
from jax.experimental.pallas import tpu as pltpu

_LN_EPS = 1e-5


def _vmem_budget_and_tiles():
    """Generation-aware scoped-VMEM limit and GEMM tile targets."""
    try:
        cap = int(pltpu.get_tpu_info().vmem_capacity_bytes)
    except Exception:
        cap = 64 * 1024 * 1024                     # conservative (v7x-sized) default
    if cap >= 100 * 1024 * 1024:                   # v5e / v6e: 128 MiB physical VMEM
        return 96 * 1024 * 1024, 512, 512, 512
    return 40 * 1024 * 1024, 256, 512, 512         # v7x: 64 MiB physical VMEM


_VMEM_LIMIT, _TM, _TN, _TK = _vmem_budget_and_tiles()


def _pick_tile(dim, target, align):
    """Largest multiple of `align` <= target that evenly divides `dim`; otherwise the
    full dimension (a full-extent block is always layout-legal; for very large
    non-divisible dims this may cost VMEM — acceptable for this model's sizes)."""
    if dim <= target:
        return dim
    t = (target // align) * align
    while t >= align:
        if dim % t == 0:
            return t
        t -= align
    return dim


# ----------------------------- matmul + bias ---------------------------------

def _matmul_bias_kernel(x_ref, w_ref, b_ref, o_ref, acc_ref):
    @pl.when(pl.program_id(2) == 0)
    def _init():
        acc_ref[...] = jnp.zeros_like(acc_ref)

    acc_ref[...] += jnp.dot(x_ref[...], w_ref[...],
                            preferred_element_type=jnp.float32)

    @pl.when(pl.program_id(2) == pl.num_programs(2) - 1)
    def _finalize():
        o_ref[...] = (acc_ref[...] + b_ref[...]).astype(o_ref.dtype)


def matmul_bias(x, w, b, out_dtype=jnp.bfloat16):
    """x:(M,K) bf16 @ w:(K,N) bf16 + b:(N,) f32 -> (M,N) out_dtype, f32 accumulation."""
    M, K = x.shape
    N = w.shape[1]
    tm = _pick_tile(M, _TM, 8)
    tn = _pick_tile(N, _TN, 128)
    tk = _pick_tile(K, _TK, 128)
    return pl.pallas_call(
        _matmul_bias_kernel,
        out_shape=jax.ShapeDtypeStruct((M, N), out_dtype),
        grid=(M // tm, N // tn, K // tk),
        in_specs=[
            pl.BlockSpec((tm, tk), lambda i, j, k: (i, k)),
            pl.BlockSpec((tk, tn), lambda i, j, k: (k, j)),
            pl.BlockSpec((1, tn), lambda i, j, k: (0, j)),
        ],
        out_specs=pl.BlockSpec((tm, tn), lambda i, j, k: (i, j)),
        scratch_shapes=[pltpu.VMEM((tm, tn), jnp.float32)],
        compiler_params=pltpu.CompilerParams(
            dimension_semantics=("parallel", "parallel", "arbitrary"),
            vmem_limit_bytes=_VMEM_LIMIT),
    )(x, w, b.reshape(1, N))


# ---------------- matmul + bias + residual + LayerNorm (fused epilogue) ------

def _matmul_residual_ln_kernel(x_ref, w_ref, b_ref, r_ref, g_ref, bt_ref,
                               o_ref, acc_ref):
    k = pl.program_id(1)

    @pl.when(k == 0)
    def _init():
        acc_ref[...] = jnp.zeros_like(acc_ref)

    acc_ref[...] += jnp.dot(x_ref[...], w_ref[...],
                            preferred_element_type=jnp.float32)

    @pl.when(k == pl.num_programs(1) - 1)
    def _finalize():
        y = acc_ref[...] + b_ref[...] + r_ref[...].astype(jnp.float32)
        mu = jnp.mean(y, axis=-1, keepdims=True)
        ms = jnp.mean(y * y, axis=-1, keepdims=True)
        var = jnp.maximum(ms - mu * mu, 0.0)
        o_ref[...] = ((y - mu) * jax.lax.rsqrt(var + _LN_EPS) * g_ref[...]
                      + bt_ref[...]).astype(o_ref.dtype)


def matmul_residual_layernorm(x, w, b, residual, gamma, beta):
    """LayerNorm((x @ w + b) + residual) -> bf16.  N (=E) kept whole per block so the
    LN reduction happens in the matmul epilogue (no extra HBM round-trip)."""
    M, K = x.shape
    N = w.shape[1]
    tm = _pick_tile(M, _TM, 8)
    tk = _pick_tile(K, _TK, 128)
    return pl.pallas_call(
        _matmul_residual_ln_kernel,
        out_shape=jax.ShapeDtypeStruct((M, N), jnp.bfloat16),
        grid=(M // tm, K // tk),
        in_specs=[
            pl.BlockSpec((tm, tk), lambda i, k: (i, k)),
            pl.BlockSpec((tk, N), lambda i, k: (k, 0)),
            pl.BlockSpec((1, N), lambda i, k: (0, 0)),
            pl.BlockSpec((tm, N), lambda i, k: (i, 0)),
            pl.BlockSpec((1, N), lambda i, k: (0, 0)),
            pl.BlockSpec((1, N), lambda i, k: (0, 0)),
        ],
        out_specs=pl.BlockSpec((tm, N), lambda i, k: (i, 0)),
        scratch_shapes=[pltpu.VMEM((tm, N), jnp.float32)],
        compiler_params=pltpu.CompilerParams(
            dimension_semantics=("parallel", "arbitrary"),
            vmem_limit_bytes=_VMEM_LIMIT),
    )(x, w, b.reshape(1, N), residual, gamma.reshape(1, N), beta.reshape(1, N))


# ------------- fused FFN: lin1 + relu + lin2 + residual + LayerNorm ----------
# Grid tiles M ("parallel") and the hidden F dim ("arbitrary").  Each F step computes
# relu(x @ w1_f + b1_f) in VMEM and immediately contracts it into a (tm, E) f32
# accumulator; x is read once and reused as the residual (no duplicate DMA).

def _ffn_ln_kernel(x_ref, w1_ref, b1_ref, w2_ref, b2_ref, g_ref, bt_ref,
                   o_ref, acc_ref):
    f = pl.program_id(1)

    @pl.when(f == 0)
    def _init():
        acc_ref[...] = jnp.zeros_like(acc_ref)

    h = jnp.dot(x_ref[...], w1_ref[...], preferred_element_type=jnp.float32)
    h = jnp.maximum(h + b1_ref[...], 0.0).astype(jnp.bfloat16)      # (tm, tf), VMEM only
    acc_ref[...] += jnp.dot(h, w2_ref[...], preferred_element_type=jnp.float32)

    @pl.when(f == pl.num_programs(1) - 1)
    def _finalize():
        y = acc_ref[...] + b2_ref[...] + x_ref[...].astype(jnp.float32)
        mu = jnp.mean(y, axis=-1, keepdims=True)
        ms = jnp.mean(y * y, axis=-1, keepdims=True)
        var = jnp.maximum(ms - mu * mu, 0.0)
        o_ref[...] = ((y - mu) * jax.lax.rsqrt(var + _LN_EPS) * g_ref[...]
                      + bt_ref[...]).astype(o_ref.dtype)


def ffn_layernorm(x, w1, b1, w2, b2, gamma, beta):
    """LayerNorm(x + lin2(relu(lin1(x)))) -> bf16; footprint O(tm*tf), never O(F,E)."""
    M, E = x.shape
    F = w1.shape[1]
    tm = _pick_tile(M, _TM, 8)
    tf = _pick_tile(F, max(_TN, 512), 128)
    return pl.pallas_call(
        _ffn_ln_kernel,
        out_shape=jax.ShapeDtypeStruct((M, E), jnp.bfloat16),
        grid=(M // tm, F // tf),
        in_specs=[
            pl.BlockSpec((tm, E), lambda i, f: (i, 0)),   # x: lin1 input + residual
            pl.BlockSpec((E, tf), lambda i, f: (0, f)),   # w1 tile
            pl.BlockSpec((1, tf), lambda i, f: (0, f)),   # b1 tile
            pl.BlockSpec((tf, E), lambda i, f: (f, 0)),   # w2 tile
            pl.BlockSpec((1, E), lambda i, f: (0, 0)),    # b2
            pl.BlockSpec((1, E), lambda i, f: (0, 0)),    # gamma
            pl.BlockSpec((1, E), lambda i, f: (0, 0)),    # beta
        ],
        out_specs=pl.BlockSpec((tm, E), lambda i, f: (i, 0)),
        scratch_shapes=[pltpu.VMEM((tm, E), jnp.float32)],
        compiler_params=pltpu.CompilerParams(
            dimension_semantics=("parallel", "arbitrary"),
            vmem_limit_bytes=_VMEM_LIMIT),
    )(x, w1, b1.reshape(1, F), w2, b2.reshape(1, E),
      gamma.reshape(1, E), beta.reshape(1, E))


# ----------------------------- attention --------------------------------------
# The attended axis is the original batch (batch_first=False bug) and is small, so one
# softmax block per grid step suffices: no online-softmax m/l/acc machinery, no kv axis.
# The 1/sqrt(Dh) scale is already folded into the q projection.

def _attention_kernel(q_ref, k_ref, v_ref, o_ref):
    s = jnp.einsum('bqd,bkd->bqk', q_ref[...], k_ref[...],
                   preferred_element_type=jnp.float32)
    m = jnp.max(s, axis=-1, keepdims=True)
    p = jnp.exp(s - m)
    l = jnp.sum(p, axis=-1, keepdims=True)
    ctx = jnp.einsum('bqk,bkd->bqd', p.astype(jnp.bfloat16), v_ref[...],
                     preferred_element_type=jnp.float32)
    o_ref[...] = (ctx * pl.reciprocal(l, approx=True)).astype(o_ref.dtype)


def attention(q, k, v):
    """q,k,v: (BH, L, Dh) bf16 -> softmax(q k^T) v, bf16.  Grid over the batch*head
    axis only ("parallel", shards across v7x's 2 TensorCores).  The batch tile is
    capped so q/k/v/out double buffers + the (tb,L,L) score block stay within ~1/4 of
    the scoped VMEM limit (v7x-safe)."""
    BH, L, Dh = q.shape
    per_tb = 16 * L * Dh + 4 * L * L                 # bytes per unit of tb
    tb_cap = max(1, (_VMEM_LIMIT // 4) // per_tb)
    tb = _pick_tile(BH, min(BH, tb_cap, 1024), 1)
    return pl.pallas_call(
        _attention_kernel,
        out_shape=jax.ShapeDtypeStruct((BH, L, Dh), jnp.bfloat16),
        grid=(BH // tb,),
        in_specs=[
            pl.BlockSpec((tb, L, Dh), lambda b: (b, 0, 0)),
            pl.BlockSpec((tb, L, Dh), lambda b: (b, 0, 0)),
            pl.BlockSpec((tb, L, Dh), lambda b: (b, 0, 0)),
        ],
        out_specs=pl.BlockSpec((tb, L, Dh), lambda b: (b, 0, 0)),
        compiler_params=pltpu.CompilerParams(
            dimension_semantics=("parallel",),
            vmem_limit_bytes=_VMEM_LIMIT),
    )(q, k, v)


# ----------------------------- Model glue (plain JAX) ------------------------

def encoder_layer(x, p, num_heads):
    # x: (L, N, E) bf16.  L = attended axis (== original batch), N = batch axis of
    # attention (== original seq), matching PyTorch batch_first=False bug-for-bug.
    L, N, E = x.shape
    H = num_heads
    Dh = E // H
    M = L * N
    x2 = x.reshape(M, E)

    # ---- self-attention ------------------------------------------------------
    qkv = matmul_bias(x2, p['in_proj_w'], p['in_proj_b'])              # (M, 3E) bf16
    q, k, v = jnp.split(qkv, 3, axis=-1)

    def to_heads(t):
        # (L*N, E) -> (L, N*H, Dh) -> (N*H, L, Dh)   (torch MHA head split)
        # TODO(synk): this transpose stays in XLA; folding it into BlockSpecs needs a
        # per-head lane transpose (Dh < 128) inside the kernel.
        return t.reshape(L, N * H, Dh).transpose(1, 0, 2)

    ctx = attention(to_heads(q), to_heads(k), to_heads(v))             # (N*H, L, Dh) bf16
    a = ctx.transpose(1, 0, 2).reshape(M, E)

    # out-proj + residual + LayerNorm1 fused (post-norm)
    h1 = matmul_residual_layernorm(a, p['out_proj_w'], p['out_proj_b'],
                                   x2, p['norm1_g'], p['norm1_b'])
    # FFN (lin1+relu+lin2) + residual + LayerNorm2 fused, F tiled
    h2 = ffn_layernorm(h1, p['lin1_w'], p['lin1_b'], p['lin2_w'], p['lin2_b'],
                       p['norm2_g'], p['norm2_b'])
    return h2.reshape(L, N, E)


def gpt_forward(params, input_ids, num_heads):
    # TODO(synk): embedding gather (jnp.take) stays in XLA; no clean rectangular
    # BlockSpec equivalent for a per-token gather.
    B, S = input_ids.shape
    tok = jnp.take(params['tok_emb'], input_ids, axis=0)               # (B, S, E)
    pos = params['pos_emb'][:S][None, :, :]                            # (1, S, E)
    x = (tok + pos).astype(jnp.bfloat16)                               # dropout = identity
    for lp in params['layers']:
        x = encoder_layer(x, lp, num_heads)
    L, N, E = x.shape
    logits = matmul_bias(x.reshape(L * N, E), params['fc_w'], params['fc_b'],
                         out_dtype=jnp.float32)
    return logits.reshape(L, N, -1)


# ----------------------------- Params -----------------------------------------
# Canonical params are f32 with weights stored pre-transposed as (K, N); values are
# snapped to bf16-representable numbers so the f32 reference and the bf16 kernel weights
# describe exactly the same initialization.

def xavier_uniform(key, fan_in, fan_out, shape):
    limit = math.sqrt(6.0 / (fan_in + fan_out))
    w = jax.random.uniform(key, shape, jnp.float32, -limit, limit)
    return w.astype(jnp.bfloat16).astype(jnp.float32)


def init_params(key, vocab_size, E, num_layers, max_seq_len):
    keys = jax.random.split(key, 3 + num_layers)
    F = 4 * E
    params = {
        'tok_emb': xavier_uniform(keys[0], E, vocab_size, (vocab_size, E)),
        'pos_emb': xavier_uniform(keys[1], E, max_seq_len, (max_seq_len, E)),
        'fc_w': xavier_uniform(keys[2], E, vocab_size, (E, vocab_size)),
        'fc_b': jnp.zeros((vocab_size,), jnp.float32),
        'layers': [],
    }
    for i in range(num_layers):
        lk = jax.random.split(keys[3 + i], 4)
        params['layers'].append({
            'in_proj_w': xavier_uniform(lk[0], E, 3 * E, (E, 3 * E)),
            'in_proj_b': jnp.zeros((3 * E,), jnp.float32),
            'out_proj_w': xavier_uniform(lk[1], E, E, (E, E)),
            'out_proj_b': jnp.zeros((E,), jnp.float32),
            'lin1_w': xavier_uniform(lk[2], E, F, (E, F)),
            'lin1_b': jnp.zeros((F,), jnp.float32),
            'lin2_w': xavier_uniform(lk[3], F, E, (F, E)),
            'lin2_b': jnp.zeros((E,), jnp.float32),
            'norm1_g': jnp.ones((E,), jnp.float32),
            'norm1_b': jnp.zeros((E,), jnp.float32),
            'norm2_g': jnp.ones((E,), jnp.float32),
            'norm2_b': jnp.zeros((E,), jnp.float32),
        })
    return params


def prepare_params(params, num_heads):
    """Kernel-side params: bf16 weights, biases/LN params/embeddings f32, with the
    1/sqrt(Dh) attention scale folded into the q slice of in_proj (weight and bias)."""
    bf = lambda t: t.astype(jnp.bfloat16)
    kp = {
        'tok_emb': params['tok_emb'],
        'pos_emb': params['pos_emb'],
        'fc_w': bf(params['fc_w']),
        'fc_b': params['fc_b'],
        'layers': [],
    }
    for p in params['layers']:
        E = p['out_proj_b'].shape[0]
        scale = 1.0 / math.sqrt(E // num_heads)
        col_scale = jnp.concatenate(
            [jnp.full((E,), scale, jnp.float32), jnp.ones((2 * E,), jnp.float32)])
        kp['layers'].append({
            'in_proj_w': bf(p['in_proj_w'] * col_scale[None, :]),
            'in_proj_b': p['in_proj_b'] * col_scale,
            'out_proj_w': bf(p['out_proj_w']),
            'out_proj_b': p['out_proj_b'],
            'lin1_w': bf(p['lin1_w']),
            'lin1_b': p['lin1_b'],
            'lin2_w': bf(p['lin2_w']),
            'lin2_b': p['lin2_b'],
            'norm1_g': p['norm1_g'], 'norm1_b': p['norm1_b'],
            'norm2_g': p['norm2_g'], 'norm2_b': p['norm2_b'],
        })
    return kp


# ----------------------------- Pure-JAX reference (for validation) -----------

def _ln_ref(h, g, b):
    mu = jnp.mean(h, axis=-1, keepdims=True)
    var = jnp.mean(jnp.square(h - mu), axis=-1, keepdims=True)
    return (h - mu) * jax.lax.rsqrt(var + _LN_EPS) * g + b


def reference_forward(params, input_ids, num_heads):
    B, S = input_ids.shape
    tok = jnp.take(params['tok_emb'], input_ids, axis=0)
    pos = params['pos_emb'][:S][None, :, :]
    x = tok + pos
    H = num_heads
    for p in params['layers']:
        L, N, E = x.shape
        Dh = E // H
        x2 = x.reshape(L * N, E)
        qkv = x2 @ p['in_proj_w'] + p['in_proj_b']
        q, k, v = jnp.split(qkv, 3, axis=-1)
        heads = lambda t: t.reshape(L, N * H, Dh).transpose(1, 0, 2)
        s = jnp.einsum('bld,bmd->blm', heads(q), heads(k)) / math.sqrt(Dh)
        ctx = jnp.einsum('blm,bmd->bld', jax.nn.softmax(s, axis=-1), heads(v))
        a = ctx.transpose(1, 0, 2).reshape(L * N, E)
        attn_out = a @ p['out_proj_w'] + p['out_proj_b']
        h1 = _ln_ref(x2 + attn_out, p['norm1_g'], p['norm1_b'])
        ff = jnp.maximum(h1 @ p['lin1_w'] + p['lin1_b'], 0.0)
        ff = ff @ p['lin2_w'] + p['lin2_b']
        x = _ln_ref(h1 + ff, p['norm2_g'], p['norm2_b']).reshape(L, N, E)
    B_, S_, E = x.shape
    logits = x.reshape(B_ * S_, E) @ params['fc_w'] + params['fc_b']
    return logits.reshape(B_, S_, -1)


# ----------------------------- Main -------------------------------------------

if __name__ == "__main__":
    vocab_size, embedding_dim, num_heads, num_layers, max_seq_len = 64, 32, 4, 2, 16
    B, S = 2, 8

    key = jax.random.PRNGKey(0)
    pkey, ikey = jax.random.split(key)
    params = init_params(pkey, vocab_size, embedding_dim, num_layers, max_seq_len)
    kparams = prepare_params(params, num_heads)
    input_ids = jax.random.randint(ikey, (B, S), 0, vocab_size, dtype=jnp.int32)

    fwd = jax.jit(functools.partial(gpt_forward, num_heads=num_heads))
    logits = fwd(kparams, input_ids)
    jax.block_until_ready(logits)

    assert logits.shape == (B, S, vocab_size), logits.shape
    assert logits.dtype == jnp.float32
    assert bool(jnp.all(jnp.isfinite(logits)))

    ref = reference_forward(params, input_ids, num_heads)
    max_err = float(jnp.max(jnp.abs(logits - ref)))
    assert max_err < 0.1, f"max abs err vs reference: {max_err}"

    print("KERNEL_OK")
</pallas_src>

<mosaic_0001>
module attributes {stable_mosaic.version = 11 : i64} {
  func.func @_matmul_bias_kernel(%arg0: i32, %arg1: i32, %arg2: i32, %arg3: memref<16x32xbf16, #tpu.memory_space<vmem>>, %arg4: memref<32x96xbf16, #tpu.memory_space<vmem>>, %arg5: memref<1x96xf32, #tpu.memory_space<vmem>>, %arg6: memref<16x96xbf16, #tpu.memory_space<vmem>>, %arg7: memref<16x96xf32, #tpu.memory_space<vmem>>) attributes {dimension_semantics = [#tpu.dimension_semantics<parallel>, #tpu.dimension_semantics<parallel>, #tpu.dimension_semantics<arbitrary>], iteration_bounds = array<i64: 1, 1, 1>, scalar_prefetch = 0 : i64, scratch_operands = 1 : i64, tpu.core_type = #tpu.core_type<tc>, window_params = [{transform_indices = @transform_0, window_bounds = array<i64: 16, 32>}, {transform_indices = @transform_1, window_bounds = array<i64: 32, 96>}, {transform_indices = @transform_2, window_bounds = array<i64: 1, 96>}, {transform_indices = @transform_3, window_bounds = array<i64: 16, 96>}]} {
    %c0_i32 = arith.constant 0 : i32
    %0 = arith.cmpi eq, %arg2, %c0_i32 : i32
    %1 = arith.extui %0 : i1 to i32
    %c0_i32_0 = arith.constant 0 : i32
    %2 = arith.cmpi ne, %1, %c0_i32_0 : i32
    scf.if %2 {
      %cst_10 = arith.constant 0.000000e+00 : f32
      %12 = vector.broadcast %cst_10 : f32 to vector<16x96xf32>
      %c0_11 = arith.constant 0 : index
      %c0_12 = arith.constant 0 : index
      %13 = vector.load %arg7[%c0_11, %c0_12] : memref<16x96xf32, #tpu.memory_space<vmem>>, vector<16x96xf32>
      tpu.vector_store %arg7[%c0_11, %c0_12], %12 {strides = array<i32>} : memref<16x96xf32, #tpu.memory_space<vmem>>, vector<16x96xf32>,
    } else {
    }
    %c0 = arith.constant 0 : index
    %c0_1 = arith.constant 0 : index
    %3 = vector.load %arg7[%c0, %c0_1] : memref<16x96xf32, #tpu.memory_space<vmem>>, vector<16x96xf32>
    %c0_2 = arith.constant 0 : index
    %c0_3 = arith.constant 0 : index
    %4 = vector.load %arg3[%c0_2, %c0_3] : memref<16x32xbf16, #tpu.memory_space<vmem>>, vector<16x32xbf16>
    %c0_4 = arith.constant 0 : index
    %c0_5 = arith.constant 0 : index
    %5 = vector.load %arg4[%c0_4, %c0_5] : memref<32x96xbf16, #tpu.memory_space<vmem>>, vector<32x96xbf16>
    %cst = arith.constant dense<0.000000e+00> : vector<16x96xf32>
    %6 = tpu.matmul %4, %5, %cst {dimension_numbers = #tpu.dot_dimension_numbers<[1], [0], [0], [1], [0, 0, 1, 1], [], []>} : vector<16x32xbf16>, vector<32x96xbf16>, vector<16x96xf32> -> vector<16x96xf32>
    %7 = arith.addf %3, %6 : vector<16x96xf32>
    %c0_6 = arith.constant 0 : index
    %c0_7 = arith.constant 0 : index
    %8 = vector.load %arg7[%c0_6, %c0_7] : memref<16x96xf32, #tpu.memory_space<vmem>>, vector<16x96xf32>
    tpu.vector_store %arg7[%c0_6, %c0_7], %7 {strides = array<i32>} : memref<16x96xf32, #tpu.memory_space<vmem>>, vector<16x96xf32>,
    %c0_i32_8 = arith.constant 0 : i32
    %9 = arith.cmpi eq, %arg2, %c0_i32_8 : i32
    %10 = arith.extui %9 : i1 to i32
    %c0_i32_9 = arith.constant 0 : i32
    %11 = arith.cmpi ne, %10, %c0_i32_9 : i32
    scf.if %11 {
      %c0_10 = arith.constant 0 : index
      %c0_11 = arith.constant 0 : index
      %12 = vector.load %arg7[%c0_10, %c0_11] : memref<16x96xf32, #tpu.memory_space<vmem>>, vector<16x96xf32>
      %c0_12 = arith.constant 0 : index
      %c0_13 = arith.constant 0 : index
      %13 = vector.load %arg5[%c0_12, %c0_13] : memref<1x96xf32, #tpu.memory_space<vmem>>, vector<1x96xf32>
      %14 = vector.broadcast %13 : vector<1x96xf32> to vector<16x96xf32>
      %15 = arith.addf %12, %14 : vector<16x96xf32>
      %16 = arith.truncf %15 : vector<16x96xf32> to vector<16x96xbf16>
      %c0_14 = arith.constant 0 : index
      %c0_15 = arith.constant 0 : index
      %17 = vector.load %arg6[%c0_14, %c0_15] : memref<16x96xbf16, #tpu.memory_space<vmem>>, vector<16x96xbf16>
      tpu.vector_store %arg6[%c0_14, %c0_15], %16 {strides = array<i32>} : memref<16x96xbf16, #tpu.memory_space<vmem>>, vector<16x96xbf16>,
    } else {
    }
    return
  }
  func.func @transform_0(%arg0: i32, %arg1: i32, %arg2: i32) -> (i32, i32) {
    %c0_i32 = arith.constant 0 : i32
    return %arg0, %arg2 : i32, i32
  }
  func.func @transform_1(%arg0: i32, %arg1: i32, %arg2: i32) -> (i32, i32) {
    %c0_i32 = arith.constant 0 : i32
    return %arg2, %arg1 : i32, i32
  }
  func.func @transform_2(%arg0: i32, %arg1: i32, %arg2: i32) -> (i32, i32) {
    %c0_i32 = arith.constant 0 : i32
    %c0_i32_0 = arith.constant 0 : i32
    return %c0_i32, %arg1 : i32, i32
  }
  func.func @transform_3(%arg0: i32, %arg1: i32, %arg2: i32) -> (i32, i32) {
    %c0_i32 = arith.constant 0 : i32
    return %arg0, %arg1 : i32, i32
  }
}

module attributes {stable_mosaic.version = 11 : i64} {
  func.func @_attention_kernel(%arg0: i32, %arg1: memref<32x2x8xbf16, #tpu.memory_space<vmem>>, %arg2: memref<32x2x8xbf16, #tpu.memory_space<vmem>>, %arg3: memref<32x2x8xbf16, #tpu.memory_space<vmem>>, %arg4: memref<32x2x8xbf16, #tpu.memory_space<vmem>>) attributes {dimension_semantics = [#tpu.dimension_semantics<parallel>], iteration_bounds = array<i64: 1>, scalar_prefetch = 0 : i64, scratch_operands = 0 : i64, tpu.core_type = #tpu.core_type<tc>, window_params = [{transform_indices = @transform_0, window_bounds = array<i64: 32, 2, 8>}, {transform_indices = @transform_1, window_bounds = array<i64: 32, 2, 8>}, {transform_indices = @transform_2, window_bounds = array<i64: 32, 2, 8>}, {transform_indices = @transform_3, window_bounds = array<i64: 32, 2, 8>}]} {
    %c0 = arith.constant 0 : index
    %c0_0 = arith.constant 0 : index
    %c0_1 = arith.constant 0 : index
    %0 = vector.load %arg1[%c0, %c0_0, %c0_1] : memref<32x2x8xbf16, #tpu.memory_space<vmem>>, vector<32x2x8xbf16>
    %c0_2 = arith.constant 0 : index
    %c0_3 = arith.constant 0 : index
    %c0_4 = arith.constant 0 : index
    %1 = vector.load %arg2[%c0_2, %c0_3, %c0_4] : memref<32x2x8xbf16, #tpu.memory_space<vmem>>, vector<32x2x8xbf16>
    "tpu.trace_start"() <{level = 10 : i32, message = "bqd,bkd->bqk"}> : () -> ()
    %cst = arith.constant dense<0.000000e+00> : vector<32x2x2xf32>
    %2 = tpu.matmul %0, %1, %cst {dimension_numbers = #tpu.dot_dimension_numbers<[2], [2], [1], [1], [0, 0, 0, 1, 1, 1], [0], [0]>} : vector<32x2x8xbf16>, vector<32x2x8xbf16>, vector<32x2x2xf32> -> vector<32x2x2xf32>
    "tpu.trace_stop"() : () -> ()
    %cst_5 = arith.constant dense<0xFF800000> : vector<32x2xf32>
    %3 = vector.multi_reduction <maximumf>, %2, %cst_5 [2] : vector<32x2x2xf32> to vector<32x2xf32>
    %4 = vector.shape_cast %3 : vector<32x2xf32> to vector<32x2x1xf32>
    %5 = vector.broadcast %4 : vector<32x2x1xf32> to vector<32x2x2xf32>
    %6 = arith.subf %2, %5 : vector<32x2x2xf32>
    %7 = math.exp %6 : vector<32x2x2xf32>
    %cst_6 = arith.constant dense<0.000000e+00> : vector<32x2xf32>
    %8 = vector.multi_reduction <add>, %7, %cst_6 [2] : vector<32x2x2xf32> to vector<32x2xf32>
    %9 = vector.shape_cast %8 : vector<32x2xf32> to vector<32x2x1xf32>
    %10 = arith.truncf %7 : vector<32x2x2xf32> to vector<32x2x2xbf16>
    %c0_7 = arith.constant 0 : index
    %c0_8 = arith.constant 0 : index
    %c0_9 = arith.constant 0 : index
    %11 = vector.load %arg3[%c0_7, %c0_8, %c0_9] : memref<32x2x8xbf16, #tpu.memory_space<vmem>>, vector<32x2x8xbf16>
    "tpu.trace_start"() <{level = 10 : i32, message = "bqk,bkd->bqd"}> : () -> ()
    %cst_10 = arith.constant dense<0.000000e+00> : vector<32x2x8xf32>
    %12 = tpu.matmul %10, %11, %cst_10 {dimension_numbers = #tpu.dot_dimension_numbers<[2], [1], [1], [2], [0, 0, 0, 1, 1, 2], [0], [0]>} : vector<32x2x2xbf16>, vector<32x2x8xbf16>, vector<32x2x8xf32> -> vector<32x2x8xf32>
    "tpu.trace_stop"() : () -> ()
    %13 = tpu.reciprocal %9 {approx = true} : vector<32x2x1xf32> -> vector<32x2x1xf32>
    %14 = vector.broadcast %13 : vector<32x2x1xf32> to vector<32x2x8xf32>
    %15 = arith.mulf %12, %14 : vector<32x2x8xf32>
    %16 = arith.truncf %15 : vector<32x2x8xf32> to vector<32x2x8xbf16>
    %c0_11 = arith.constant 0 : index
    %c0_12 = arith.constant 0 : index
    %c0_13 = arith.constant 0 : index
    %17 = vector.load %arg4[%c0_11, %c0_12, %c0_13] : memref<32x2x8xbf16, #tpu.memory_space<vmem>>, vector<32x2x8xbf16>
    tpu.vector_store %arg4[%c0_11, %c0_12, %c0_13], %16 {strides = array<i32>} : memref<32x2x8xbf16, #tpu.memory_space<vmem>>, vector<32x2x8xbf16>,
    return
  }
  func.func @transform_0(%arg0: i32) -> (i32, i32, i32) {
    %c0_i32 = arith.constant 0 : i32
    %c0_i32_0 = arith.constant 0 : i32
    %c0_i32_1 = arith.constant 0 : i32
    return %arg0, %c0_i32, %c0_i32_0 : i32, i32, i32
  }
  func.func @transform_1(%arg0: i32) -> (i32, i32, i32) {
    %c0_i32 = arith.constant 0 : i32
    %c0_i32_0 = arith.constant 0 : i32
    %c0_i32_1 = arith.constant 0 : i32
    return %arg0, %c0_i32, %c0_i32_0 : i32, i32, i32
  }
  func.func @transform_2(%arg0: i32) -> (i32, i32, i32) {
    %c0_i32 = arith.constant 0 : i32
    %c0_i32_0 = arith.constant 0 : i32
    %c0_i32_1 = arith.constant 0 : i32
    return %arg0, %c0_i32, %c0_i32_0 : i32, i32, i32
  }
  func.func @transform_3(%arg0: i32) -> (i32, i32, i32) {
    %c0_i32 = arith.constant 0 : i32
    %c0_i32_0 = arith.constant 0 : i32
    %c0_i32_1 = arith.constant 0 : i32
    return %arg0, %c0_i32, %c0_i32_0 : i32, i32, i32
  }
}

module attributes {stable_mosaic.version = 11 : i64} {
  func.func @_matmul_residual_ln_kernel(%arg0: i32, %arg1: i32, %arg2: memref<16x32xbf16, #tpu.memory_space<vmem>>, %arg3: memref<32x32xbf16, #tpu.memory_space<vmem>>, %arg4: memref<1x32xf32, #tpu.memory_space<vmem>>, %arg5: memref<16x32xbf16, #tpu.memory_space<vmem>>, %arg6: memref<1x32xf32, #tpu.memory_space<vmem>>, %arg7: memref<1x32xf32, #tpu.memory_space<vmem>>, %arg8: memref<16x32xbf16, #tpu.memory_space<vmem>>, %arg9: memref<16x32xf32, #tpu.memory_space<vmem>>) attributes {dimension_semantics = [#tpu.dimension_semantics<parallel>, #tpu.dimension_semantics<arbitrary>], iteration_bounds = array<i64: 1, 1>, scalar_prefetch = 0 : i64, scratch_operands = 1 : i64, tpu.core_type = #tpu.core_type<tc>, window_params = [{transform_indices = @transform_0, window_bounds = array<i64: 16, 32>}, {transform_indices = @transform_1, window_bounds = array<i64: 32, 32>}, {pipeline_mode = #tpu.pipeline_mode<synchronous>, transform_indices = @transform_2, window_bounds = array<i64: 1, 32>}, {transform_indices = @transform_3, window_bounds = array<i64: 16, 32>}, {pipeline_mode = #tpu.pipeline_mode<synchronous>, transform_indices = @transform_4, window_bounds = array<i64: 1, 32>}, {pipeline_mode = #tpu.pipeline_mode<synchronous>, transform_indices = @transform_5, window_bounds = array<i64: 1, 32>}, {transform_indices = @transform_6, window_bounds = array<i64: 16, 32>}]} {
    %c0_i32 = arith.constant 0 : i32
    %0 = arith.cmpi eq, %arg1, %c0_i32 : i32
    %1 = arith.extui %0 : i1 to i32
    %c0_i32_0 = arith.constant 0 : i32
    %2 = arith.cmpi ne, %1, %c0_i32_0 : i32
    scf.if %2 {
      %cst_10 = arith.constant 0.000000e+00 : f32
      %12 = vector.broadcast %cst_10 : f32 to vector<16x32xf32>
      %c0_11 = arith.constant 0 : index
      %c0_12 = arith.constant 0 : index
      %13 = vector.load %arg9[%c0_11, %c0_12] : memref<16x32xf32, #tpu.memory_space<vmem>>, vector<16x32xf32>
      tpu.vector_store %arg9[%c0_11, %c0_12], %12 {strides = array<i32>} : memref<16x32xf32, #tpu.memory_space<vmem>>, vector<16x32xf32>,
    } else {
    }
    %c0 = arith.constant 0 : index
    %c0_1 = arith.constant 0 : index
    %3 = vector.load %arg9[%c0, %c0_1] : memref<16x32xf32, #tpu.memory_space<vmem>>, vector<16x32xf32>
    %c0_2 = arith.constant 0 : index
    %c0_3 = arith.constant 0 : index
    %4 = vector.load %arg2[%c0_2, %c0_3] : memref<16x32xbf16, #tpu.memory_space<vmem>>, vector<16x32xbf16>
    %c0_4 = arith.constant 0 : index
    %c0_5 = arith.constant 0 : index
    %5 = vector.load %arg3[%c0_4, %c0_5] : memref<32x32xbf16, #tpu.memory_space<vmem>>, vector<32x32xbf16>
    %cst = arith.constant dense<0.000000e+00> : vector<16x32xf32>
    %6 = tpu.matmul %4, %5, %cst {dimension_numbers = #tpu.dot_dimension_numbers<[1], [0], [0], [1], [0, 0, 1, 1], [], []>} : vector<16x32xbf16>, vector<32x32xbf16>, vector<16x32xf32> -> vector<16x32xf32>
    %7 = arith.addf %3, %6 : vector<16x32xf32>
    %c0_6 = arith.constant 0 : index
    %c0_7 = arith.constant 0 : index
    %8 = vector.load %arg9[%c0_6, %c0_7] : memref<16x32xf32, #tpu.memory_space<vmem>>, vector<16x32xf32>
    tpu.vector_store %arg9[%c0_6, %c0_7], %7 {strides = array<i32>} : memref<16x32xf32, #tpu.memory_space<vmem>>, vector<16x32xf32>,
    %c0_i32_8 = arith.constant 0 : i32
    %9 = arith.cmpi eq, %arg1, %c0_i32_8 : i32
    %10 = arith.extui %9 : i1 to i32
    %c0_i32_9 = arith.constant 0 : i32
    %11 = arith.cmpi ne, %10, %c0_i32_9 : i32
    scf.if %11 {
      %c0_10 = arith.constant 0 : index
      %c0_11 = arith.constant 0 : index
      %12 = vector.load %arg9[%c0_10, %c0_11] : memref<16x32xf32, #tpu.memory_space<vmem>>, vector<16x32xf32>
      %c0_12 = arith.constant 0 : index
      %c0_13 = arith.constant 0 : index
      %13 = vector.load %arg4[%c0_12, %c0_13] : memref<1x32xf32, #tpu.memory_space<vmem>>, vector<1x32xf32>
      %14 = vector.broadcast %13 : vector<1x32xf32> to vector<16x32xf32>
      %15 = arith.addf %12, %14 : vector<16x32xf32>
      %c0_14 = arith.constant 0 : index
      %c0_15 = arith.constant 0 : index
      %16 = vector.load %arg5[%c0_14, %c0_15] : memref<16x32xbf16, #tpu.memory_space<vmem>>, vector<16x32xbf16>
      %17 = arith.extf %16 : vector<16x32xbf16> to vector<16x32xf32>
      %18 = arith.addf %15, %17 : vector<16x32xf32>
      %cst_16 = arith.constant dense<0.000000e+00> : vector<16xf32>
      %19 = vector.multi_reduction <add>, %18, %cst_16 [1] : vector<16x32xf32> to vector<16xf32>
      %20 = vector.shape_cast %19 : vector<16xf32> to vector<16x1xf32>
      %cst_17 = arith.constant 3.200000e+01 : f32
      %21 = vector.broadcast %cst_17 : f32 to vector<16x1xf32>
      %22 = arith.divf %20, %21 : vector<16x1xf32>
      %23 = arith.mulf %18, %18 : vector<16x32xf32>
      %cst_18 = arith.constant dense<0.000000e+00> : vector<16xf32>
      %24 = vector.multi_reduction <add>, %23, %cst_18 [1] : vector<16x32xf32> to vector<16xf32>
      %25 = vector.shape_cast %24 : vector<16xf32> to vector<16x1xf32>
      %cst_19 = arith.constant 3.200000e+01 : f32
      %26 = vector.broadcast %cst_19 : f32 to vector<16x1xf32>
      %27 = arith.divf %25, %26 : vector<16x1xf32>
      %28 = arith.mulf %22, %22 : vector<16x1xf32>
      %29 = arith.subf %27, %28 : vector<16x1xf32>
      %cst_20 = arith.constant 0.000000e+00 : f32
      %30 = vector.broadcast %cst_20 : f32 to vector<16x1xf32>
      %31 = arith.maximumf %29, %30 : vector<16x1xf32>
      %32 = vector.broadcast %22 : vector<16x1xf32> to vector<16x32xf32>
      %33 = arith.subf %18, %32 : vector<16x32xf32>
      %cst_21 = arith.constant 9.99999974E-6 : f32
      %34 = vector.broadcast %cst_21 : f32 to vector<16x1xf32>
      %35 = arith.addf %31, %34 : vector<16x1xf32>
      %36 = math.rsqrt %35 : vector<16x1xf32>
      %37 = vector.broadcast %36 : vector<16x1xf32> to vector<16x32xf32>
      %38 = arith.mulf %33, %37 : vector<16x32xf32>
      %c0_22 = arith.constant 0 : index
      %c0_23 = arith.constant 0 : index
      %39 = vector.load %arg6[%c0_22, %c0_23] : memref<1x32xf32, #tpu.memory_space<vmem>>, vector<1x32xf32>
      %40 = vector.broadcast %39 : vector<1x32xf32> to vector<16x32xf32>
      %41 = arith.mulf %38, %40 : vector<16x32xf32>
      %c0_24 = arith.constant 0 : index
      %c0_25 = arith.constant 0 : index
      %42 = vector.load %arg7[%c0_24, %c0_25] : memref<1x32xf32, #tpu.memory_space<vmem>>, vector<1x32xf32>
      %43 = vector.broadcast %42 : vector<1x32xf32> to vector<16x32xf32>
      %44 = arith.addf %41, %43 : vector<16x32xf32>
      %45 = arith.truncf %44 : vector<16x32xf32> to vector<16x32xbf16>
      %c0_26 = arith.constant 0 : index
      %c0_27 = arith.constant 0 : index
      %46 = vector.load %arg8[%c0_26, %c0_27] : memref<16x32xbf16, #tpu.memory_space<vmem>>, vector<16x32xbf16>
      tpu.vector_store %arg8[%c0_26, %c0_27], %45 {strides = array<i32>} : memref<16x32xbf16, #tpu.memory_space<vmem>>, vector<16x32xbf16>,
    } else {
    }
    return
  }
  func.func @transform_0(%arg0: i32, %arg1: i32) -> (i32, i32) {
    %c0_i32 = arith.constant 0 : i32
    return %arg0, %arg1 : i32, i32
  }
  func.func @transform_1(%arg0: i32, %arg1: i32) -> (i32, i32) {
    %c0_i32 = arith.constant 0 : i32
    %c0_i32_0 = arith.constant 0 : i32
    return %arg1, %c0_i32 : i32, i32
  }
  func.func @transform_2(%arg0: i32, %arg1: i32) -> (i32, i32) {
    %c0_i32 = arith.constant 0 : i32
    %c0_i32_0 = arith.constant 0 : i32
    %c0_i32_1 = arith.constant 0 : i32
    return %c0_i32, %c0_i32_0 : i32, i32
  }
  func.func @transform_3(%arg0: i32, %arg1: i32) -> (i32, i32) {
    %c0_i32 = arith.constant 0 : i32
    %c0_i32_0 = arith.constant 0 : i32
    return %arg0, %c0_i32 : i32, i32
  }
  func.func @transform_4(%arg0: i32, %arg1: i32) -> (i32, i32) {
    %c0_i32 = arith.constant 0 : i32
    %c0_i32_0 = arith.constant 0 : i32
    %c0_i32_1 = arith.constant 0 : i32
    return %c0_i32, %c0_i32_0 : i32, i32
  }
  func.func @transform_5(%arg0: i32, %arg1: i32) -> (i32, i32) {
    %c0_i32 = arith.constant 0 : i32
    %c0_i32_0 = arith.constant 0 : i32
    %c0_i32_1 = arith.constant 0 : i32
    return %c0_i32, %c0_i32_0 : i32, i32
  }
  func.func @transform_6(%arg0: i32, %arg1: i32) -> (i32, i32) {
    %c0_i32 = arith.constant 0 : i32
    %c0_i32_0 = arith.constant 0 : i32
    return %arg0, %c0_i32 : i32, i32
  }
}

module attributes {stable_mosaic.version = 11 : i64} {
  func.func @_ffn_ln_kernel(%arg0: i32, %arg1: i32, %arg2: memref<16x32xbf16, #tpu.memory_space<vmem>>, %arg3: memref<32x128xbf16, #tpu.memory_space<vmem>>, %arg4: memref<1x128xf32, #tpu.memory_space<vmem>>, %arg5: memref<128x32xbf16, #tpu.memory_space<vmem>>, %arg6: memref<1x32xf32, #tpu.memory_space<vmem>>, %arg7: memref<1x32xf32, #tpu.memory_space<vmem>>, %arg8: memref<1x32xf32, #tpu.memory_space<vmem>>, %arg9: memref<16x32xbf16, #tpu.memory_space<vmem>>, %arg10: memref<16x32xf32, #tpu.memory_space<vmem>>) attributes {dimension_semantics = [#tpu.dimension_semantics<parallel>, #tpu.dimension_semantics<arbitrary>], iteration_bounds = array<i64: 1, 1>, scalar_prefetch = 0 : i64, scratch_operands = 1 : i64, tpu.core_type = #tpu.core_type<tc>, window_params = [{transform_indices = @transform_0, window_bounds = array<i64: 16, 32>}, {transform_indices = @transform_1, window_bounds = array<i64: 32, 128>}, {transform_indices = @transform_2, window_bounds = array<i64: 1, 128>}, {transform_indices = @transform_3, window_bounds = array<i64: 128, 32>}, {pipeline_mode = #tpu.pipeline_mode<synchronous>, transform_indices = @transform_4, window_bounds = array<i64: 1, 32>}, {pipeline_mode = #tpu.pipeline_mode<synchronous>, transform_indices = @transform_5, window_bounds = array<i64: 1, 32>}, {pipeline_mode = #tpu.pipeline_mode<synchronous>, transform_indices = @transform_6, window_bounds = array<i64: 1, 32>}, {transform_indices = @transform_7, window_bounds = array<i64: 16, 32>}]} {
    %c0_i32 = arith.constant 0 : i32
    %0 = arith.cmpi eq, %arg1, %c0_i32 : i32
    %1 = arith.extui %0 : i1 to i32
    %c0_i32_0 = arith.constant 0 : i32
    %2 = arith.cmpi ne, %1, %c0_i32_0 : i32
    scf.if %2 {
      %cst_16 = arith.constant 0.000000e+00 : f32
      %20 = vector.broadcast %cst_16 : f32 to vector<16x32xf32>
      %c0_17 = arith.constant 0 : index
      %c0_18 = arith.constant 0 : index
      %21 = vector.load %arg10[%c0_17, %c0_18] : memref<16x32xf32, #tpu.memory_space<vmem>>, vector<16x32xf32>
      tpu.vector_store %arg10[%c0_17, %c0_18], %20 {strides = array<i32>} : memref<16x32xf32, #tpu.memory_space<vmem>>, vector<16x32xf32>,
    } else {
    }
    %c0 = arith.constant 0 : index
    %c0_1 = arith.constant 0 : index
    %3 = vector.load %arg2[%c0, %c0_1] : memref<16x32xbf16, #tpu.memory_space<vmem>>, vector<16x32xbf16>
    %c0_2 = arith.constant 0 : index
    %c0_3 = arith.constant 0 : index
    %4 = vector.load %arg3[%c0_2, %c0_3] : memref<32x128xbf16, #tpu.memory_space<vmem>>, vector<32x128xbf16>
    %cst = arith.constant dense<0.000000e+00> : vector<16x128xf32>
    %5 = tpu.matmul %3, %4, %cst {dimension_numbers = #tpu.dot_dimension_numbers<[1], [0], [0], [1], [0, 0, 1, 1], [], []>} : vector<16x32xbf16>, vector<32x128xbf16>, vector<16x128xf32> -> vector<16x128xf32>
    %c0_4 = arith.constant 0 : index
    %c0_5 = arith.constant 0 : index
    %6 = vector.load %arg4[%c0_4, %c0_5] : memref<1x128xf32, #tpu.memory_space<vmem>>, vector<1x128xf32>
    %7 = vector.broadcast %6 : vector<1x128xf32> to vector<16x128xf32>
    %8 = arith.addf %5, %7 : vector<16x128xf32>
    %cst_6 = arith.constant 0.000000e+00 : f32
    %9 = vector.broadcast %cst_6 : f32 to vector<16x128xf32>
    %10 = arith.maximumf %8, %9 : vector<16x128xf32>
    %11 = arith.truncf %10 : vector<16x128xf32> to vector<16x128xbf16>
    %c0_7 = arith.constant 0 : index
    %c0_8 = arith.constant 0 : index
    %12 = vector.load %arg10[%c0_7, %c0_8] : memref<16x32xf32, #tpu.memory_space<vmem>>, vector<16x32xf32>
    %c0_9 = arith.constant 0 : index
    %c0_10 = arith.constant 0 : index
    %13 = vector.load %arg5[%c0_9, %c0_10] : memref<128x32xbf16, #tpu.memory_space<vmem>>, vector<128x32xbf16>
    %cst_11 = arith.constant dense<0.000000e+00> : vector<16x32xf32>
    %14 = tpu.matmul %11, %13, %cst_11 {dimension_numbers = #tpu.dot_dimension_numbers<[1], [0], [0], [1], [0, 0, 1, 1], [], []>} : vector<16x128xbf16>, vector<128x32xbf16>, vector<16x32xf32> -> vector<16x32xf32>
    %15 = arith.addf %12, %14 : vector<16x32xf32>
    %c0_12 = arith.constant 0 : index
    %c0_13 = arith.constant 0 : index
    %16 = vector.load %arg10[%c0_12, %c0_13] : memref<16x32xf32, #tpu.memory_space<vmem>>, vector<16x32xf32>
    tpu.vector_store %arg10[%c0_12, %c0_13], %15 {strides = array<i32>} : memref<16x32xf32, #tpu.memory_space<vmem>>, vector<16x32xf32>,
    %c0_i32_14 = arith.constant 0 : i32
    %17 = arith.cmpi eq, %arg1, %c0_i32_14 : i32
    %18 = arith.extui %17 : i1 to i32
    %c0_i32_15 = arith.constant 0 : i32
    %19 = arith.cmpi ne, %18, %c0_i32_15 : i32
    scf.if %19 {
      %c0_16 = arith.constant 0 : index
      %c0_17 = arith.constant 0 : index
      %20 = vector.load %arg10[%c0_16, %c0_17] : memref<16x32xf32, #tpu.memory_space<vmem>>, vector<16x32xf32>
      %c0_18 = arith.constant 0 : index
      %c0_19 = arith.constant 0 : index
      %21 = vector.load %arg6[%c0_18, %c0_19] : memref<1x32xf32, #tpu.memory_space<vmem>>, vector<1x32xf32>
      %22 = vector.broadcast %21 : vector<1x32xf32> to vector<16x32xf32>
      %23 = arith.addf %20, %22 : vector<16x32xf32>
      %c0_20 = arith.constant 0 : index
      %c0_21 = arith.constant 0 : index
      %24 = vector.load %arg2[%c0_20, %c0_21] : memref<16x32xbf16, #tpu.memory_space<vmem>>, vector<16x32xbf16>
      %25 = arith.extf %24 : vector<16x32xbf16> to vector<16x32xf32>
      %26 = arith.addf %23, %25 : vector<16x32xf32>
      %cst_22 = arith.constant dense<0.000000e+00> : vector<16xf32>
      %27 = vector.multi_reduction <add>, %26, %cst_22 [1] : vector<16x32xf32> to vector<16xf32>
      %28 = vector.shape_cast %27 : vector<16xf32> to vector<16x1xf32>
      %cst_23 = arith.constant 3.200000e+01 : f32
      %29 = vector.broadcast %cst_23 : f32 to vector<16x1xf32>
      %30 = arith.divf %28, %29 : vector<16x1xf32>
      %31 = arith.mulf %26, %26 : vector<16x32xf32>
      %cst_24 = arith.constant dense<0.000000e+00> : vector<16xf32>
      %32 = vector.multi_reduction <add>, %31, %cst_24 [1] : vector<16x32xf32> to vector<16xf32>
      %33 = vector.shape_cast %32 : vector<16xf32> to vector<16x1xf32>
      %cst_25 = arith.constant 3.200000e+01 : f32
      %34 = vector.broadcast %cst_25 : f32 to vector<16x1xf32>
      %35 = arith.divf %33, %34 : vector<16x1xf32>
      %36 = arith.mulf %30, %30 : vector<16x1xf32>
      %37 = arith.subf %35, %36 : vector<16x1xf32>
      %cst_26 = arith.constant 0.000000e+00 : f32
      %38 = vector.broadcast %cst_26 : f32 to vector<16x1xf32>
      %39 = arith.maximumf %37, %38 : vector<16x1xf32>
      %40 = vector.broadcast %30 : vector<16x1xf32> to vector<16x32xf32>
      %41 = arith.subf %26, %40 : vector<16x32xf32>
      %cst_27 = arith.constant 9.99999974E-6 : f32
      %42 = vector.broadcast %cst_27 : f32 to vector<16x1xf32>
      %43 = arith.addf %39, %42 : vector<16x1xf32>
      %44 = math.rsqrt %43 : vector<16x1xf32>
      %45 = vector.broadcast %44 : vector<16x1xf32> to vector<16x32xf32>
      %46 = arith.mulf %41, %45 : vector<16x32xf32>
      %c0_28 = arith.constant 0 : index
      %c0_29 = arith.constant 0 : index
      %47 = vector.load %arg7[%c0_28, %c0_29] : memref<1x32xf32, #tpu.memory_space<vmem>>, vector<1x32xf32>
      %48 = vector.broadcast %47 : vector<1x32xf32> to vector<16x32xf32>
      %49 = arith.mulf %46, %48 : vector<16x32xf32>
      %c0_30 = arith.constant 0 : index
      %c0_31 = arith.constant 0 : index
      %50 = vector.load %arg8[%c0_30, %c0_31] : memref<1x32xf32, #tpu.memory_space<vmem>>, vector<1x32xf32>
      %51 = vector.broadcast %50 : vector<1x32xf32> to vector<16x32xf32>
      %52 = arith.addf %49, %51 : vector<16x32xf32>
      %53 = arith.truncf %52 : vector<16x32xf32> to vector<16x32xbf16>
      %c0_32 = arith.constant 0 : index
      %c0_33 = arith.constant 0 : index
      %54 = vector.load %arg9[%c0_32, %c0_33] : memref<16x32xbf16, #tpu.memory_space<vmem>>, vector<16x32xbf16>
      tpu.vector_store %arg9[%c0_32, %c0_33], %53 {strides = array<i32>} : memref<16x32xbf16, #tpu.memory_space<vmem>>, vector<16x32xbf16>,
    } else {
    }
    return
  }
  func.func @transform_0(%arg0: i32, %arg1: i32) -> (i32, i32) {
    %c0_i32 = arith.constant 0 : i32
    %c0_i32_0 = arith.constant 0 : i32
    return %arg0, %c0_i32 : i32, i32
  }
  func.func @transform_1(%arg0: i32, %arg1: i32) -> (i32, i32) {
    %c0_i32 = arith.constant 0 : i32
    %c0_i32_0 = arith.constant 0 : i32
    return %c0_i32, %arg1 : i32, i32
  }
  func.func @transform_2(%arg0: i32, %arg1: i32) -> (i32, i32) {
    %c0_i32 = arith.constant 0 : i32
    %c0_i32_0 = arith.constant 0 : i32
    return %c0_i32, %arg1 : i32, i32
  }
  func.func @transform_3(%arg0: i32, %arg1: i32) -> (i32, i32) {
    %c0_i32 = arith.constant 0 : i32
    %c0_i32_0 = arith.constant 0 : i32
    return %arg1, %c0_i32 : i32, i32
  }
  func.func @transform_4(%arg0: i32, %arg1: i32) -> (i32, i32) {
    %c0_i32 = arith.constant 0 : i32
    %c0_i32_0 = arith.constant 0 : i32
    %c0_i32_1 = arith.constant 0 : i32
    return %c0_i32, %c0_i32_0 : i32, i32
  }
  func.func @transform_5(%arg0: i32, %arg1: i32) -> (i32, i32) {
    %c0_i32 = arith.constant 0 : i32
    %c0_i32_0 = arith.constant 0 : i32
    %c0_i32_1 = arith.constant 0 : i32
    return %c0_i32, %c0_i32_0 : i32, i32
  }
  func.func @transform_6(%arg0: i32, %arg1: i32) -> (i32, i32) {
    %c0_i32 = arith.constant 0 : i32
    %c0_i32_0 = arith.constant 0 : i32
    %c0_i32_1 = arith.constant 0 : i32
    return %c0_i32, %c0_i32_0 : i32, i32
  }
  func.func @transform_7(%arg0: i32, %arg1: i32) -> (i32, i32) {
    %c0_i32 = arith.constant 0 : i32
    %c0_i32_0 = arith.constant 0 : i32
    return %arg0, %c0_i32 : i32, i32
  }
}

module attributes {stable_mosaic.version = 11 : i64} {
  func.func @_matmul_bias_kernel(%arg0: i32, %arg1: i32, %arg2: i32, %arg3: memref<16x32xbf16, #tpu.memory_space<vmem>>, %arg4: memref<32x64xbf16, #tpu.memory_space<vmem>>, %arg5: memref<1x64xf32, #tpu.memory_space<vmem>>, %arg6: memref<16x64xf32, #tpu.memory_space<vmem>>, %arg7: memref<16x64xf32, #tpu.memory_space<vmem>>) attributes {dimension_semantics = [#tpu.dimension_semantics<parallel>, #tpu.dimension_semantics<parallel>, #tpu.dimension_semantics<arbitrary>], iteration_bounds = array<i64: 1, 1, 1>, scalar_prefetch = 0 : i64, scratch_operands = 1 : i64, tpu.core_type = #tpu.core_type<tc>, window_params = [{transform_indices = @transform_0, window_bounds = array<i64: 16, 32>}, {transform_indices = @transform_1, window_bounds = array<i64: 32, 64>}, {transform_indices = @transform_2, window_bounds = array<i64: 1, 64>}, {transform_indices = @transform_3, window_bounds = array<i64: 16, 64>}]} {
    %c0_i32 = arith.constant 0 : i32
    %0 = arith.cmpi eq, %arg2, %c0_i32 : i32
    %1 = arith.extui %0 : i1 to i32
    %c0_i32_0 = arith.constant 0 : i32
    %2 = arith.cmpi ne, %1, %c0_i32_0 : i32
    scf.if %2 {
      %cst_10 = arith.constant 0.000000e+00 : f32
      %12 = vector.broadcast %cst_10 : f32 to vector<16x64xf32>
      %c0_11 = arith.constant 0 : index
      %c0_12 = arith.constant 0 : index
      %13 = vector.load %arg7[%c0_11, %c0_12] : memref<16x64xf32, #tpu.memory_space<vmem>>, vector<16x64xf32>
      tpu.vector_store %arg7[%c0_11, %c0_12], %12 {strides = array<i32>} : memref<16x64xf32, #tpu.memory_space<vmem>>, vector<16x64xf32>,
    } else {
    }
    %c0 = arith.constant 0 : index
    %c0_1 = arith.constant 0 : index
    %3 = vector.load %arg7[%c0, %c0_1] : memref<16x64xf32, #tpu.memory_space<vmem>>, vector<16x64xf32>
    %c0_2 = arith.constant 0 : index
    %c0_3 = arith.constant 0 : index
    %4 = vector.load %arg3[%c0_2, %c0_3] : memref<16x32xbf16, #tpu.memory_space<vmem>>, vector<16x32xbf16>
    %c0_4 = arith.constant 0 : index
    %c0_5 = arith.constant 0 : index
    %5 = vector.load %arg4[%c0_4, %c0_5] : memref<32x64xbf16, #tpu.memory_space<vmem>>, vector<32x64xbf16>
    %cst = arith.constant dense<0.000000e+00> : vector<16x64xf32>
    %6 = tpu.matmul %4, %5, %cst {dimension_numbers = #tpu.dot_dimension_numbers<[1], [0], [0], [1], [0, 0, 1, 1], [], []>} : vector<16x32xbf16>, vector<32x64xbf16>, vector<16x64xf32> -> vector<16x64xf32>
    %7 = arith.addf %3, %6 : vector<16x64xf32>
    %c0_6 = arith.constant 0 : index
    %c0_7 = arith.constant 0 : index
    %8 = vector.load %arg7[%c0_6, %c0_7] : memref<16x64xf32, #tpu.memory_space<vmem>>, vector<16x64xf32>
    tpu.vector_store %arg7[%c0_6, %c0_7], %7 {strides = array<i32>} : memref<16x64xf32, #tpu.memory_space<vmem>>, vector<16x64xf32>,
    %c0_i32_8 = arith.constant 0 : i32
    %9 = arith.cmpi eq, %arg2, %c0_i32_8 : i32
    %10 = arith.extui %9 : i1 to i32
    %c0_i32_9 = arith.constant 0 : i32
    %11 = arith.cmpi ne, %10, %c0_i32_9 : i32
    scf.if %11 {
      %c0_10 = arith.constant 0 : index
      %c0_11 = arith.constant 0 : index
      %12 = vector.load %arg7[%c0_10, %c0_11] : memref<16x64xf32, #tpu.memory_space<vmem>>, vector<16x64xf32>
      %c0_12 = arith.constant 0 : index
      %c0_13 = arith.constant 0 : index
      %13 = vector.load %arg5[%c0_12, %c0_13] : memref<1x64xf32, #tpu.memory_space<vmem>>, vector<1x64xf32>
      %14 = vector.broadcast %13 : vector<1x64xf32> to vector<16x64xf32>
      %15 = arith.addf %12, %14 : vector<16x64xf32>
      %c0_14 = arith.constant 0 : index
      %c0_15 = arith.constant 0 : index
      %16 = vector.load %arg6[%c0_14, %c0_15] : memref<16x64xf32, #tpu.memory_space<vmem>>, vector<16x64xf32>
      tpu.vector_store %arg6[%c0_14, %c0_15], %15 {strides = array<i32>} : memref<16x64xf32, #tpu.memory_space<vmem>>, vector<16x64xf32>,
    } else {
    }
    return
  }
  func.func @transform_0(%arg0: i32, %arg1: i32, %arg2: i32) -> (i32, i32) {
    %c0_i32 = arith.constant 0 : i32
    return %arg0, %arg2 : i32, i32
  }
  func.func @transform_1(%arg0: i32, %arg1: i32, %arg2: i32) -> (i32, i32) {
    %c0_i32 = arith.constant 0 : i32
    return %arg2, %arg1 : i32, i32
  }
  func.func @transform_2(%arg0: i32, %arg1: i32, %arg2: i32) -> (i32, i32) {
    %c0_i32 = arith.constant 0 : i32
    %c0_i32_0 = arith.constant 0 : i32
    return %c0_i32, %arg1 : i32, i32
  }
  func.func @transform_3(%arg0: i32, %arg1: i32, %arg2: i32) -> (i32, i32) {
    %c0_i32 = arith.constant 0 : i32
    return %arg0, %arg1 : i32, i32
  }
}

</mosaic_0001>

<bundles_post_ra>
// kernel: gpt_forward.9
= control target key start
LH: loop header
LB: loop body
LE: loop exit
PB: predicated region body
PF: predicated region fallthrough
CT: control target
= control target key end

     0   :  { %vm19_vm0 = vcmask 785408   ;;  %v108_v1 = vmov 0.0   ;;  %vm47_vm1 = vcmask 261120   ;;  %vm83_vm2 = vcmask 781312   ;;  %s151_s1 = inlined_call_operand.vmem [shape: bf16[32,96], index: 1, kind: input, shape index: {}]   ;;  %s152_s2 = inlined_call_operand.vmem [shape: f32[1,96], index: 2, kind: input, shape index: {}]   ;;  %s153_s0 = inlined_call_operand.vmem [shape: bf16[16,32], index: 0, kind: input, shape index: {}]   ;;  %s154_s3 = inlined_call_operand.vmem [shape: bf16[16,96], index: 3, kind: output, shape index: {}]  }
   0x1   :  { %v105_v0 = vld [vmem:[%s151_s1 + $0x8] sm:$0xff]  ;;  %20 = vst.msk [vmem:[#allocation2] sm:$0xff] %vm19_vm0, %v108_v1  ;;  %v104_v2 = vld [vmem:[%s151_s1] sm:$0xff] }
   0x2   :  { %21 = vst.msk [vmem:[#allocation2 + $0x8] sm:$0xff] %vm19_vm0, %v108_v1  ;;  %57 = vmatpush.bf16.msra.mxu0 %v105_v0  ;;  %v103_v3 = vld [vmem:[%s153_s0] sm:$0xff] }
   0x3   :  { %v107_v8 = vld [vmem:[%s152_s2] ss:$0 sm:$0xff] }
   0x6   :  { %58 = vmatpush.bf16.msra.mxu0 %v104_v2 }
   0x8   :  { %v22_v4 = vld [vmem:[#allocation2] sm:$0xff] }
   0x9   :  { %102 = vmatmul.msk.bf16.vlgmr.msra.gmra.mxu0 %vm47_vm1, %v103_v3  ;;  %v23_v7 = vld [vmem:[#allocation2 + $0x8] sm:$0xff] }
  0x86   :  { %v60_v5 = vpop.f32.mrf.mxu0 }
  0x87   :  { %v65_v6 = vadd.f32 %v60_v5, %v22_v4 }
  0x89   :  { %68 = vst.msk [vmem:[#allocation2] sm:$0xff] %vm19_vm0, %v65_v6 }
  0x8e   :  { %v62_v9 = vpop.f32.mrf.mxu0 }
  0x8f   :  { %v66_v10 = vadd.f32 %v62_v9, %v23_v7 }
  0x90   :  { %v73_v11 = vld [vmem:[#allocation2] sm:$0xff] }
  0x91   :  { %v79_v12 = vadd.f32 %v107_v8, %v73_v11  ;;  %69 = vst.msk [vmem:[#allocation2 + $0x8] sm:$0xff] %vm19_vm0, %v66_v10 }
  0x93   :  { %v81_v13 = vpack.c.bf16 %v79_v12, %v79_v12 }
  0x95   :  { %84 = vst.msk [vmem:[%s154_s3] sm:$0xf] %vm83_vm2, %v81_v13 }
  0x98   :  { %v74_v14 = vld [vmem:[#allocation2 + $0x8] sm:$0xff] }
  0x99   :  { %v80_v15 = vadd.f32 %v107_v8, %v74_v14 }
  0x9b   :  { %v82_v16 = vpack.c.bf16 %v80_v15, %v80_v15 }
  0x9d   :  { %85 = vst.msk [vmem:[%s154_s3 + $0x4] sm:$0xf] %vm83_vm2, %v82_v16 }

// kernel: gpt_forward.11
= control target key start
LH: loop header
LB: loop body
LE: loop exit
PB: predicated region body
PF: predicated region fallthrough
CT: control target
= control target key end

     0   :  { %vm28_vm0 = vcmask 261120   ;;  %v204_v1 = vmov 0.0   ;;  %v205_v26 = vmov 32.0   ;;  %vm166_vm6 = vcmask 257024   ;;  %s283_s1 = inlined_call_operand.vmem [shape: bf16[32,32], index: 1, kind: input, shape index: {}]   ;;  %s284_s0 = inlined_call_operand.vmem [shape: bf16[16,32], index: 0, kind: input, shape index: {}]   ;;  %s285_s2 = inlined_call_operand.vmem [shape: f32[1,32], index: 2, kind: input, shape index: {}]   ;;  %s286_s3 = inlined_call_operand.vmem [shape: bf16[16,32], index: 3, kind: input, shape index: {}]   ;;  %s287_s4 = inlined_call_operand.vmem [shape: f32[1,32], index: 4, kind: input, shape index: {}]   ;;  %s288_s5 = inlined_call_operand.vmem [shape: f32[1,32], index: 5, kind: input, shape index: {}]   ;;  %s289_s6 = inlined_call_operand.vmem [shape: bf16[16,32], index: 6, kind: output, shape index: {}]  }
   0x1   :  { %v188_v0 = vld [vmem:[%s283_s1 + $0x8] sm:$0xff]  ;;  %29 = vst.msk [vmem:[#allocation2] sm:$0xff] %vm28_vm0, %v204_v1  ;;  %v187_v2 = vld [vmem:[%s283_s1] sm:$0xff]  ;;  %198 = vrcp.f32 %v205_v26 }
   0x2   :  { %30 = vst.msk [vmem:[#allocation2 + $0x8] sm:$0xff] %vm28_vm0, %v204_v1  ;;  %66 = vmatpush.bf16.msra.mxu0 %v188_v0  ;;  %v186_v3 = vld [vmem:[%s284_s0] sm:$0xff] }
   0x3   :  { %v190_v8 = vld [vmem:[%s286_s3] sm:$0xff]  }
   0x4   :  { %v195_v9 = vld [vmem:[%s285_s2] ss:$0 sm:$0xff]  ;;  %v191_v12 = vunpack.c.l.bf16 %v190_v8  ;;  %v192_v19 = vunpack.c.h.bf16 %v190_v8 }
   0x5   :  { %v196_v57 = vld [vmem:[%s287_s4] ss:$0 sm:$0xff] }
   0x6   :  { %67 = vmatpush.bf16.msra.mxu0 %v187_v2  ;;  %v197_v60 = vld [vmem:[%s288_s5] ss:$0 sm:$0xff] }
   0x7   :  { %v199_v27 = vpop.eup %198 }
   0x8   :  { %v31_v4 = vld [vmem:[#allocation2] sm:$0xff]  ;;  %v102_v28 = vmul.f32 32.0, %v199_v27  ;;  %vm106_vm1 = vweird.f32 %v199_v27 }
   0x9   :  { %185 = vmatmul.msk.bf16.vlgmr.msra.gmra.mxu0 %vm28_vm0, %v186_v3  ;;  %v32_v7 = vld [vmem:[#allocation2 + $0x8] sm:$0xff] }
   0xa   :  { %v103_v29 = vsub.f32 1.0, %v102_v28 }
   0xc   :  { %v104_v30 = vmul.f32 %v199_v27, %v103_v29 }
   0xe   :  { %v105_v31 = vadd.f32 %v199_v27, %v104_v30 }
  0x10   :  { %v107_v32 = vsel %vm106_vm1, %v199_v27, %v105_v31 }
  0x86   :  { %v69_v5 = vpop.f32.mrf.mxu0 }
  0x87   :  { %v74_v6 = vadd.f32 %v69_v5, %v31_v4 }
  0x89   :  { %76 = vst.msk [vmem:[#allocation2] sm:$0xff] %vm28_vm0, %v74_v6 }
  0x8e   :  { %v71_v10 = vpop.f32.mrf.mxu0 }
  0x8f   :  { %v75_v11 = vadd.f32 %v71_v10, %v32_v7 }
  0x90   :  { %v81_v13 = vld [vmem:[#allocation2] sm:$0xff] }
  0x91   :  { %77 = vst.msk [vmem:[#allocation2 + $0x8] sm:$0xff] %vm28_vm0, %v75_v11  ;;  %v87_v14 = vadd.f32 %v195_v9, %v81_v13 }
  0x93   :  { %v93_v15 = vadd.f32 %v191_v12, %v87_v14 }
  0x95   :  { %v95_v16 = vsel %vm28_vm0, %v93_v15, 0.0  ;;  %v110_v17 = vmul.f32 %v93_v15, %v93_v15 }
  0x96   :  { %96 = vadd.xlane.f32.xlu0 %v95_v16 }
  0x97   :  { %v112_v18 = vsel %vm28_vm0, %v110_v17, 0.0 }
  0x98   :  { %113 = vadd.xlane.f32.xlu1 %v112_v18  ;;  %v82_v20 = vld [vmem:[#allocation2 + $0x8] sm:$0xff] }
  0x99   :  { %v88_v21 = vadd.f32 %v195_v9, %v82_v20 }
  0x9b   :  { %v263_v22 = vadd.f32 %v192_v19, %v88_v21 }
  0x9d   :  { %v98_v23 = vsel %vm28_vm0, %v263_v22, 0.0  ;;  %v111_v24 = vmul.f32 %v263_v22, %v263_v22 }
  0x9e   :  { %99 = vadd.xlane.f32.xlu0 %v98_v23 }
  0x9f   :  { %v115_v25 = vsel %vm28_vm0, %v111_v24, 0.0 }
  0xa0   :  { %116 = vadd.xlane.f32.xlu1 %v115_v25 }
 0x109   :  { %v97_v33 = vpop.xlane.xlu0 %96 }
 0x10a   :  { %v108_v34 = vmul.f32 %v107_v32, %v97_v33 }
 0x10b   :  { %v114_v35 = vpop.xlane.xlu1 %113 }
 0x10c   :  { %v120_v36 = vmul.f32 %v108_v34, %v108_v34  ;;  %v118_v37 = vmul.f32 %v114_v35, %v107_v32  ;;  %v126_v56 = vsub.f32 %v93_v15, %v108_v34 }
 0x10e   :  { %v122_v38 = vsub.f32 %v118_v37, %v120_v36 }
 0x110   :  { %v124_v39 = vmax.f32 %v122_v38, 0.0 }
 0x111   :  { %v100_v40 = vpop.xlane.xlu0 %99 }
 0x112   :  { %v128_v41 = vadd.f32 1e-05, %v124_v39  ;;  %v109_v42 = vmul.f32 %v107_v32, %v100_v40 }
 0x113   :  { %v117_v43 = vpop.xlane.xlu1 %116 }
 0x114   :  { %200 = vrsqrt.f32 %v128_v41  ;;  %v121_v44 = vmul.f32 %v109_v42, %v109_v42  ;;  %v119_v45 = vmul.f32 %v117_v43, %v107_v32  ;;  %vm136_vm3 = vweird.f32 %v128_v41 }
 0x115   :  { %v127_v5 = vsub.f32 %v263_v22, %v109_v42 }
 0x116   :  { %v123_v46 = vsub.f32 %v119_v45, %v121_v44 }
 0x118   :  { %v125_v47 = vmax.f32 %v123_v46, 0.0 }
 0x11a   :  { %v201_v48 = vpop.eup %200  ;;  %v129_v50 = vadd.f32 1e-05, %v125_v47 }
 0x11b   :  { %v131_v49 = vmul.f32 %v201_v48, %v128_v41  ;;  %vm137_vm2 = vweird.f32 %v201_v48 }
 0x11c   :  { %202 = vrsqrt.f32 %v129_v50  ;;  %vm138_vm4 = vmor %vm136_vm3, %vm137_vm2  ;;  %vm146_vm7 = vweird.f32 %v129_v50 }
 0x11d   :  { %v132_v51 = vmul.f32 %v201_v48, %v131_v49 }
 0x11f   :  { %v133_v52 = vmul.f32 0.5, %v132_v51 }
 0x121   :  { %v134_v53 = vsub.f32 1.5, %v133_v52 }
 0x122   :  { %v203_v54 = vpop.eup %202 }
 0x123   :  { %v135_v55 = vmul.f32 %v201_v48, %v134_v53  ;;  %v141_v58 = vmul.f32 %v203_v54, %v129_v50  ;;  %vm147_vm5 = vweird.f32 %v203_v54 }
 0x124   :  { %vm148_vm8 = vmor %vm146_vm7, %vm147_vm5 }
 0x125   :  { %v139_v59 = vsel %vm138_vm4, %v201_v48, %v135_v55  ;;  %v142_v62 = vmul.f32 %v203_v54, %v141_v58 }
 0x126   :  { %v150_v61 = vmul.f32 %v139_v59, %v126_v56 }
 0x127   :  { %v143_v0 = vmul.f32 0.5, %v142_v62 }
 0x128   :  { %v156_v63 = vmul.f32 %v196_v57, %v150_v61 }
 0x129   :  { %v144_v2 = vsub.f32 1.5, %v143_v0 }
 0x12a   :  { %v162_v1 = vadd.f32 %v197_v60, %v156_v63 }
 0x12b   :  { %v145_v4 = vmul.f32 %v203_v54, %v144_v2 }
 0x12c   :  { %v164_v3 = vpack.c.bf16 %v162_v1, %v162_v1 }
 0x12d   :  { %v149_v6 = vsel %vm148_vm8, %v203_v54, %v145_v4 }
 0x12e   :  { %167 = vst.msk [vmem:[%s289_s6] sm:$0xf] %vm166_vm6, %v164_v3  ;;  %v151_v7 = vmul.f32 %v149_v6, %v127_v5 }
 0x130   :  { %v157_v8 = vmul.f32 %v196_v57, %v151_v7 }
 0x132   :  { %v163_v9 = vadd.f32 %v197_v60, %v157_v8 }
 0x134   :  { %v165_v10 = vpack.c.bf16 %v163_v9, %v163_v9 }
 0x136   :  { %168 = vst.msk [vmem:[%s289_s6 + $0x4] sm:$0xf] %vm166_vm6, %v165_v10 }

// kernel: gpt_forward.12
= control target key start
LH: loop header
LB: loop body
LE: loop exit
PB: predicated region body
PF: predicated region fallthrough
CT: control target
= control target key end

     0   :  { %vm31_vm0 = vcmask 261120   ;;  %v333_v11 = vmov 0.0   ;;  %v334_v42 = vmov 32.0   ;;  %vm254_vm6 = vcmask 257024   ;;  %s444_s1 = inlined_call_operand.vmem [shape: bf16[32,128], index: 1, kind: input, shape index: {}]   ;;  %s445_s3 = inlined_call_operand.vmem [shape: bf16[128,32], index: 3, kind: input, shape index: {}]   ;;  %s446_s2 = inlined_call_operand.vmem [shape: f32[1,128], index: 2, kind: input, shape index: {}]   ;;  %s447_s0 = inlined_call_operand.vmem [shape: bf16[16,32], index: 0, kind: input, shape index: {}]   ;;  %s448_s4 = inlined_call_operand.vmem [shape: f32[1,32], index: 4, kind: input, shape index: {}]   ;;  %s449_s5 = inlined_call_operand.vmem [shape: f32[1,32], index: 5, kind: input, shape index: {}]   ;;  %s450_s6 = inlined_call_operand.vmem [shape: f32[1,32], index: 6, kind: input, shape index: {}]   ;;  %s451_s7 = inlined_call_operand.vmem [shape: bf16[16,32], index: 7, kind: output, shape index: {}]  }
   0x1   :  { %v308_v0 = vld [vmem:[%s444_s1 + $0x8] sm:$0xff]  ;;  %v316_v1 = vld [vmem:[%s445_s3 + $0x38] sm:$0xff]  ;;  %v307_v2 = vld [vmem:[%s444_s1] sm:$0xff]  ;;  %32 = vst.msk [vmem:[#allocation2] sm:$0xff] %vm31_vm0, %v333_v11  ;;  %327 = vrcp.f32 %v334_v42 }
   0x2   :  { %71 = vmatpush.bf16.msra.mxu0 %v308_v0  ;;  %148 = vmatpush.bf16.msra.mxu1 %v316_v1  ;;  %v315_v3 = vld [vmem:[%s445_s3 + $0x30] sm:$0xff]  ;;  %v306_v4 = vld [vmem:[%s447_s0] sm:$0xff]  ;;  %v314_v5 = vld [vmem:[%s445_s3 + $0x28] sm:$0xff]  ;;  %33 = vst.msk [vmem:[#allocation2 + $0x8] sm:$0xff] %vm31_vm0, %v333_v11 }
   0x3   :  { %v313_v6 = vld [vmem:[%s445_s3 + $0x20] sm:$0xff]  ;;  %v312_v7 = vld [vmem:[%s445_s3 + $0x18] sm:$0xff]  ;;  %v311_v8 = vld [vmem:[%s445_s3 + $0x10] sm:$0xff] }
   0x4   :  { %v310_v9 = vld [vmem:[%s445_s3 + $0x8] sm:$0xff]  ;;  %v309_v10 = vld [vmem:[%s445_s3] sm:$0xff] }
   0x5   :  { %v323_v13 = vld [vmem:[%s446_s2] ss:$0 sm:$0xff] }
   0x6   :  { %72 = vmatpush.bf16.msra.mxu0 %v307_v2  ;;  %149 = vmatpush.bf16.msra.mxu1 %v315_v3  ;;  %v318_v24 = vld [vmem:[%s447_s0] sm:$0xff]  }
   0x7   :  { %v324_v25 = vld [vmem:[%s448_s4] ss:$0 sm:$0xff]  ;;  %v319_v28 = vunpack.c.l.bf16 %v318_v24  ;;  %v320_v35 = vunpack.c.h.bf16 %v318_v24  ;;  %v328_v43 = vpop.eup %327 }
   0x8   :  { %v82_v20 = vld [vmem:[#allocation2] sm:$0xff]  ;;  %v190_v44 = vmul.f32 32.0, %v328_v43  ;;  %vm194_vm1 = vweird.f32 %v328_v43 }
   0x9   :  { %273 = vmatmul.msk.bf16.vlgmr.msra.gmra.mxu0 %vm31_vm0, %v306_v4  ;;  %v83_v23 = vld [vmem:[#allocation2 + $0x8] sm:$0xff] }
   0xa   :  { %150 = vmatpush.bf16.msra.mxu1 %v314_v5  ;;  %v191_v45 = vsub.f32 1.0, %v190_v44 }
   0xc   :  { %v192_v46 = vmul.f32 %v328_v43, %v191_v45 }
   0xe   :  { %151 = vmatpush.bf16.msra.mxu1 %v313_v6  ;;  %v193_v47 = vadd.f32 %v328_v43, %v192_v46 }
  0x10   :  { %v195_v48 = vsel %vm194_vm1, %v328_v43, %v193_v47 }
  0x12   :  { %152 = vmatpush.bf16.msra.mxu1 %v312_v7 }
  0x16   :  { %153 = vmatpush.bf16.msra.mxu1 %v311_v8 }
  0x1a   :  { %154 = vmatpush.bf16.msra.mxu1 %v310_v9  ;;  %v325_v9 = vld [vmem:[%s449_s5] ss:$0 sm:$0xff] }
  0x1e   :  { %155 = vmatpush.bf16.msra.mxu1 %v309_v10 }
  0x86   :  { %v74_v12 = vpop.f32.mrf.mxu0 }
  0x87   :  { %v75_v14 = vadd.f32 %v323_v13, %v74_v12  ;;  %v326_v12 = vld [vmem:[%s450_s6] ss:$0 sm:$0xff] }
  0x89   :  { %v79_v17 = vmax.f32 %v75_v14, 0.0 }
  0x8e   :  { %v76_v15 = vpop.f32.mrf.mxu0 }
  0x8f   :  { %v77_v16 = vadd.f32 %v323_v13, %v76_v15 }
  0x91   :  { %v80_v18 = vmax.f32 %v77_v16, 0.0 }
  0x93   :  { %v81_v19 = vpack.c.bf16 %v80_v18, %v79_v17 }
  0x95   :  { %156 = vmatmul.bf16.vlgmr.msra.gmra.mxu1 %v81_v19 }
 0x112   :  { %v157_v21 = vpop.f32.mrf.mxu1 }
 0x113   :  { %v162_v22 = vadd.f32 %v157_v21, %v82_v20 }
 0x115   :  { %164 = vst.msk [vmem:[#allocation2] sm:$0xff] %vm31_vm0, %v162_v22 }
 0x11a   :  { %v159_v26 = vpop.f32.mrf.mxu1 }
 0x11b   :  { %v163_v27 = vadd.f32 %v159_v26, %v83_v23 }
 0x11c   :  { %v169_v29 = vld [vmem:[#allocation2] sm:$0xff] }
 0x11d   :  { %165 = vst.msk [vmem:[#allocation2 + $0x8] sm:$0xff] %vm31_vm0, %v163_v27  ;;  %v175_v30 = vadd.f32 %v324_v25, %v169_v29 }
 0x11f   :  { %v181_v31 = vadd.f32 %v319_v28, %v175_v30 }
 0x121   :  { %v183_v32 = vsel %vm31_vm0, %v181_v31, 0.0  ;;  %v198_v33 = vmul.f32 %v181_v31, %v181_v31 }
 0x122   :  { %184 = vadd.xlane.f32.xlu0 %v183_v32 }
 0x123   :  { %v200_v34 = vsel %vm31_vm0, %v198_v33, 0.0 }
 0x124   :  { %201 = vadd.xlane.f32.xlu1 %v200_v34  ;;  %v170_v36 = vld [vmem:[#allocation2 + $0x8] sm:$0xff] }
 0x125   :  { %v176_v37 = vadd.f32 %v324_v25, %v170_v36 }
 0x127   :  { %v424_v38 = vadd.f32 %v320_v35, %v176_v37 }
 0x129   :  { %v186_v39 = vsel %vm31_vm0, %v424_v38, 0.0  ;;  %v199_v40 = vmul.f32 %v424_v38, %v424_v38 }
 0x12a   :  { %187 = vadd.xlane.f32.xlu0 %v186_v39 }
 0x12b   :  { %v203_v41 = vsel %vm31_vm0, %v199_v40, 0.0 }
 0x12c   :  { %204 = vadd.xlane.f32.xlu1 %v203_v41 }
 0x195   :  { %v185_v49 = vpop.xlane.xlu0 %184 }
 0x196   :  { %v196_v50 = vmul.f32 %v195_v48, %v185_v49 }
 0x197   :  { %v202_v51 = vpop.xlane.xlu1 %201 }
 0x198   :  { %v208_v52 = vmul.f32 %v196_v50, %v196_v50  ;;  %v206_v53 = vmul.f32 %v202_v51, %v195_v48  ;;  %v214_v8 = vsub.f32 %v181_v31, %v196_v50 }
 0x19a   :  { %v210_v54 = vsub.f32 %v206_v53, %v208_v52 }
 0x19c   :  { %v212_v55 = vmax.f32 %v210_v54, 0.0 }
 0x19d   :  { %v188_v56 = vpop.xlane.xlu0 %187 }
 0x19e   :  { %v216_v57 = vadd.f32 1e-05, %v212_v55  ;;  %v197_v58 = vmul.f32 %v195_v48, %v188_v56 }
 0x19f   :  { %v205_v59 = vpop.xlane.xlu1 %204 }
 0x1a0   :  { %329 = vrsqrt.f32 %v216_v57  ;;  %v209_v60 = vmul.f32 %v197_v58, %v197_v58  ;;  %v207_v61 = vmul.f32 %v205_v59, %v195_v48  ;;  %vm224_vm3 = vweird.f32 %v216_v57 }
 0x1a1   :  { %v215_v21 = vsub.f32 %v424_v38, %v197_v58 }
 0x1a2   :  { %v211_v62 = vsub.f32 %v207_v61, %v209_v60 }
 0x1a4   :  { %v213_v63 = vmax.f32 %v211_v62, 0.0 }
 0x1a6   :  { %v330_v0 = vpop.eup %329  ;;  %v217_v2 = vadd.f32 1e-05, %v213_v63 }
 0x1a7   :  { %v219_v1 = vmul.f32 %v330_v0, %v216_v57  ;;  %vm225_vm2 = vweird.f32 %v330_v0 }
 0x1a8   :  { %331 = vrsqrt.f32 %v217_v2  ;;  %vm226_vm4 = vmor %vm224_vm3, %vm225_vm2  ;;  %vm234_vm7 = vweird.f32 %v217_v2 }
 0x1a9   :  { %v220_v3 = vmul.f32 %v330_v0, %v219_v1 }
 0x1ab   :  { %v221_v4 = vmul.f32 0.5, %v220_v3 }
 0x1ad   :  { %v222_v5 = vsub.f32 1.5, %v221_v4 }
 0x1ae   :  { %v332_v6 = vpop.eup %331 }
 0x1af   :  { %v223_v7 = vmul.f32 %v330_v0, %v222_v5  ;;  %v229_v10 = vmul.f32 %v332_v6, %v217_v2  ;;  %vm235_vm5 = vweird.f32 %v332_v6 }
 0x1b0   :  { %vm236_vm8 = vmor %vm234_vm7, %vm235_vm5 }
 0x1b1   :  { %v227_v11 = vsel %vm226_vm4, %v330_v0, %v223_v7  ;;  %v230_v14 = vmul.f32 %v332_v6, %v229_v10 }
 0x1b2   :  { %v238_v13 = vmul.f32 %v227_v11, %v214_v8 }
 0x1b3   :  { %v231_v16 = vmul.f32 0.5, %v230_v14 }
 0x1b4   :  { %v244_v15 = vmul.f32 %v325_v9, %v238_v13 }
 0x1b5   :  { %v232_v18 = vsub.f32 1.5, %v231_v16 }
 0x1b6   :  { %v250_v17 = vadd.f32 %v326_v12, %v244_v15 }
 0x1b7   :  { %v233_v20 = vmul.f32 %v332_v6, %v232_v18 }
 0x1b8   :  { %v252_v19 = vpack.c.bf16 %v250_v17, %v250_v17 }
 0x1b9   :  { %v237_v22 = vsel %vm236_vm8, %v332_v6, %v233_v20 }
 0x1ba   :  { %255 = vst.msk [vmem:[%s451_s7] sm:$0xf] %vm254_vm6, %v252_v19  ;;  %v239_v23 = vmul.f32 %v237_v22, %v215_v21 }
 0x1bc   :  { %v245_v24 = vmul.f32 %v325_v9, %v239_v23 }
 0x1be   :  { %v251_v25 = vadd.f32 %v326_v12, %v245_v24 }
 0x1c0   :  { %v253_v26 = vpack.c.bf16 %v251_v25, %v251_v25 }
 0x1c2   :  { %256 = vst.msk [vmem:[%s451_s7 + $0x4] sm:$0xf] %vm254_vm6, %v253_v26 }

// kernel: gpt_forward.17
= control target key start
LH: loop header
LB: loop body
LE: loop exit
PB: predicated region body
PF: predicated region fallthrough
CT: control target
= control target key end

     0   :  { %vm20_vm0 = vcmask 523264   ;;  %v149_v1 = vmov 0.0   ;;  %s194_s0 = inlined_call_operand.vmem [shape: bf16[16,32], index: 0, kind: input, shape index: {}]   ;;  %s195_s1 = inlined_call_operand.vmem [shape: bf16[32,64], index: 1, kind: input, shape index: {}]   ;;  %s196_s2 = inlined_call_operand.vmem [shape: f32[1,64], index: 2, kind: input, shape index: {}]   ;;  %s197_s3 = inlined_call_operand.hbm [shape: f32[16,64], index: 3, kind: output, shape index: {}]  }
   0x1   :  { %v117_v0 = vld [vmem:[%s195_s1 + $0x8] sm:$0xff]  ;;  %21 = vst.msk [vmem:[#allocation2] sm:$0xff] %vm20_vm0, %v149_v1 }
   0x2   :  { %8 = vsyncpa [#allocation4], 0  ;;  %58 = vmatpush.bf16.msra.mxu0 %v117_v0  ;;  %v116_v2 = vld [vmem:[%s195_s1] sm:$0xff]  ;;  %22 = vst.msk [vmem:[#allocation2 + $0x8] sm:$0xff] %vm20_vm0, %v149_v1  ;;  %vm48_vm1 = vcmask 261120   ;;  %s90_s22 = sshll.u32 %s197_s3, 4  ;;  %s91_s22 = int_to_ptr.hbm [resolvable:$true] %s90_s22 }
   0x3   :  { %v115_v3 = vld [vmem:[%s194_s0] sm:$0xff]  ;;  %s150_s0 = smov [#allocation3]   ;;  %s152_s23 = smov 8  }
   0x4   :  { %v122_v8 = vld [vmem:[%s196_s2] ss:$0 sm:$0xff]  ;;  %s88_s1 = sshll.u32 %s150_s0, 4  ;;  %s151_s2 = smov 128   ;;  %s89_s1 = int_to_ptr.vmem [resolvable:$true] %s88_s1 }
   0x6   :  { %59 = vmatpush.bf16.msra.mxu0 %v116_v2 }
   0x8   :  { %v23_v4 = vld [vmem:[#allocation2] sm:$0xff] }
   0x9   :  { %114 = vmatmul.msk.bf16.vlgmr.msra.gmra.mxu0 %vm48_vm1, %v115_v3  ;;  %v24_v7 = vld [vmem:[#allocation2 + $0x8] sm:$0xff] }
  0x86   :  { %v61_v5 = vpop.f32.mrf.mxu0 }
  0x87   :  { %v66_v6 = vadd.f32 %v61_v5, %v23_v4 }
  0x89   :  { %69 = vst.msk [vmem:[#allocation2] sm:$0xff] %vm20_vm0, %v66_v6 }
  0x8e   :  { %v63_v9 = vpop.f32.mrf.mxu0 }
  0x8f   :  { %v67_v10 = vadd.f32 %v63_v9, %v24_v7 }
  0x90   :  { %v74_v11 = vld [vmem:[#allocation2] sm:$0xff] }
  0x91   :  { %70 = vst.msk [vmem:[#allocation2 + $0x8] sm:$0xff] %vm20_vm0, %v67_v10  ;;  %v80_v12 = vadd.f32 %v122_v8, %v74_v11 }
  0x93   :  { %82 = vst.msk [vmem:[#allocation3] sm:$0xff] %vm20_vm0, %v80_v12 }
  0x98   :  { %v75_v13 = vld [vmem:[#allocation2 + $0x8] sm:$0xff] }
  0x99   :  { %v81_v14 = vadd.f32 %v122_v8, %v75_v13 }
  0x9b   :  { %83 = vst.msk [vmem:[#allocation3 + $0x8] sm:$0xff] %vm20_vm0, %v81_v14 }
  0x9c   :  { %96 = dma.vmem_to_hbm [thread:$0]  %s89_s1, 256, %s91_s22, [#allocation4], %s151_s2, %s151_s2, %s152_s23  }
  0x9d   :  { %147 = dma.done.wait [#allocation4], 256  }
  0x9e   :  { %148 = vsyncadd [#allocation4], 4294967040 }
  0x9f   :  { %101 = vsyncpa [#allocation4], 1 }

// kernel: gpt_forward.10
= control target key start
LH: loop header
LB: loop body
LE: loop exit
PB: predicated region body
PF: predicated region fallthrough
CT: control target
= control target key end

     0   :  { %vm79_vm0 = vcmask 64512   ;;  %vm688_vm1 = vcmask 9216   ;;  %vm1045_vm2 = vcmask 1040384   ;;  %vm1041_vm3 = vcmask 15360   ;;  %s2732_s1 = inlined_call_operand.vmem [shape: bf16[32,2,8], index: 1, kind: input, shape index: {}]   ;;  %s2733_s0 = inlined_call_operand.vmem [shape: bf16[32,2,8], index: 0, kind: input, shape index: {}]   ;;  %s2734_s2 = inlined_call_operand.vmem [shape: bf16[32,2,8], index: 2, kind: input, shape index: {}]   ;;  %s2735_s3 = inlined_call_operand.vmem [shape: bf16[32,2,8], index: 3, kind: output, shape index: {}]  }
   0x1   :  { %v47_v0 = vld [vmem:[%s2732_s1] sm:$0x1]  ;;  %v48_v1 = vld [vmem:[%s2732_s1 + $0x1] sm:$0x1]  ;;  %v49_v2 = vld [vmem:[%s2732_s1 + $0x2] sm:$0x1] }
   0x2   :  { %v84_v3 = vsel %vm79_vm0, %v47_v0, 0  ;;  %v103_v4 = vsel %vm79_vm0, %v48_v1, 0  ;;  %v122_v5 = vsel %vm79_vm0, %v49_v2, 0  ;;  %v50_v6 = vld [vmem:[%s2732_s1 + $0x3] sm:$0x1]  ;;  %vm1747_vm4 = vcmask 57344  }
   0x3   :  { %93 = vmatpush.bf16.xpose.msra.mxu0 %v84_v3  ;;  %112 = vmatpush.bf16.xpose.msra.mxu1 %v103_v4  ;;  %v141_v7 = vsel %vm79_vm0, %v50_v6, 0  ;;  %v53_v8 = vld [vmem:[%s2732_s1 + $0x6] sm:$0x1]  ;;  %v54_v10 = vld [vmem:[%s2732_s1 + $0x7] sm:$0x1] }
   0x4   :  { %131 = vmatpush.bf16.xpose.msra.mxu2 %v122_v5  ;;  %150 = vmatpush.bf16.xpose.msra.mxu3 %v141_v7  ;;  %v198_v9 = vsel %vm79_vm0, %v53_v8, 0  ;;  %v51_v11 = vld [vmem:[%s2732_s1 + $0x4] sm:$0x1]  ;;  %v15_v12 = vld [vmem:[%s2733_s0] sm:$0x1]  ;;  %v217_v13 = vsel %vm79_vm0, %v54_v10, 0 }
   0x5   :  { %v160_v14 = vsel %vm79_vm0, %v51_v11, 0  ;;  %v52_v15 = vld [vmem:[%s2732_s1 + $0x5] sm:$0x1]  ;;  %v16_v16 = vld [vmem:[%s2733_s0 + $0x1] sm:$0x1] }
   0x6   :  { %v17_v17 = vld [vmem:[%s2733_s0 + $0x2] sm:$0x1]  ;;  %v179_v18 = vsel %vm79_vm0, %v52_v15, 0  ;;  %v18_v19 = vld [vmem:[%s2733_s0 + $0x3] sm:$0x1] }
   0x7   :  { %v57_v20 = vld [vmem:[%s2732_s1 + $0xa] sm:$0x1]  ;;  %v58_v21 = vld [vmem:[%s2732_s1 + $0xb] sm:$0x1]  ;;  %v55_v24 = vld [vmem:[%s2732_s1 + $0x8] sm:$0x1] }
   0x8   :  { %v274_v22 = vsel %vm79_vm0, %v57_v20, 0  ;;  %v293_v23 = vsel %vm79_vm0, %v58_v21, 0  ;;  %v236_v25 = vsel %vm79_vm0, %v55_v24, 0  ;;  %v56_v26 = vld [vmem:[%s2732_s1 + $0x9] sm:$0x1] }
   0x9   :  { %v255_v27 = vsel %vm79_vm0, %v56_v26, 0  ;;  %v61_v28 = vld [vmem:[%s2732_s1 + $0xe] sm:$0x1]  ;;  %v62_v29 = vld [vmem:[%s2732_s1 + $0xf] sm:$0x1] }
   0xa   :  { %1784 = vmatmul.msk.bf16.vlgmr.msra.gmra.mxu0 %vm79_vm0, %v15_v12  ;;  %1785 = vmatmul.msk.bf16.vlgmr.msra.gmra.mxu1 %vm79_vm0, %v16_v16  ;;  %v19_v30 = vld [vmem:[%s2733_s0 + $0x4] sm:$0x1]  ;;  %v20_v31 = vld [vmem:[%s2733_s0 + $0x5] sm:$0x1]  ;;  %v59_v32 = vld [vmem:[%s2732_s1 + $0xc] sm:$0x1] }
   0xb   :  { %169 = vmatpush.bf16.xpose.msrb.mxu0 %v160_v14  ;;  %188 = vmatpush.bf16.xpose.msrb.mxu1 %v179_v18  ;;  %v21_v33 = vld [vmem:[%s2733_s0 + $0x6] sm:$0x1]  ;;  %v22_v34 = vld [vmem:[%s2733_s0 + $0x7] sm:$0x1]  ;;  %v350_v35 = vsel %vm79_vm0, %v61_v28, 0  ;;  %v369_v36 = vsel %vm79_vm0, %v62_v29, 0 }
   0xc   :  { %207 = vmatpush.bf16.xpose.msrb.mxu2 %v198_v9  ;;  %226 = vmatpush.bf16.xpose.msrb.mxu3 %v217_v13  ;;  %v312_v37 = vsel %vm79_vm0, %v59_v32, 0  ;;  %v60_v38 = vld [vmem:[%s2732_s1 + $0xd] sm:$0x1]  ;;  %v65_v40 = vld [vmem:[%s2732_s1 + $0x12] sm:$0x1] }
   0xd   :  { %1786 = vmatmul.msk.bf16.vlgmr.msra.gmra.mxu2 %vm79_vm0, %v17_v17  ;;  %1787 = vmatmul.msk.bf16.vlgmr.msra.gmra.mxu3 %vm79_vm0, %v18_v19  ;;  %v331_v39 = vsel %vm79_vm0, %v60_v38, 0  ;;  %v66_v41 = vld [vmem:[%s2732_s1 + $0x13] sm:$0x1]  ;;  %v23_v42 = vld [vmem:[%s2733_s0 + $0x8] sm:$0x1]  ;;  %v426_v47 = vsel %vm79_vm0, %v65_v40, 0 }
   0xe   :  { %v24_v43 = vld [vmem:[%s2733_s0 + $0x9] sm:$0x1]  ;;  %v63_v44 = vld [vmem:[%s2732_s1 + $0x10] sm:$0x1]  ;;  %v25_v45 = vld [vmem:[%s2733_s0 + $0xa] sm:$0x1] }
   0xf   :  { %v26_v46 = vld [vmem:[%s2733_s0 + $0xb] sm:$0x1]  ;;  %v445_v48 = vsel %vm79_vm0, %v66_v41, 0  ;;  %v388_v49 = vsel %vm79_vm0, %v63_v44, 0  ;;  %v64_v50 = vld [vmem:[%s2732_s1 + $0x11] sm:$0x1] }
  0x10   :  { %v407_v51 = vsel %vm79_vm0, %v64_v50, 0  ;;  %v69_v52 = vld [vmem:[%s2732_s1 + $0x16] sm:$0x1]  ;;  %v70_v53 = vld [vmem:[%s2732_s1 + $0x17] sm:$0x1] }
  0x11   :  { %v27_v54 = vld [vmem:[%s2733_s0 + $0xc] sm:$0x1]  ;;  %v28_v55 = vld [vmem:[%s2733_s0 + $0xd] sm:$0x1]  ;;  %v67_v56 = vld [vmem:[%s2732_s1 + $0x14] sm:$0x1] }
  0x12   :  { %v29_v57 = vld [vmem:[%s2733_s0 + $0xe] sm:$0x1]  ;;  %v30_v58 = vld [vmem:[%s2733_s0 + $0xf] sm:$0x1]  ;;  %v502_v59 = vsel %vm79_vm0, %v69_v52, 0  ;;  %v521_v60 = vsel %vm79_vm0, %v70_v53, 0 }
  0x13   :  { %245 = vmatpush.bf16.xpose.msra.mxu0 %v236_v25  ;;  %264 = vmatpush.bf16.xpose.msra.mxu1 %v255_v27  ;;  %v464_v61 = vsel %vm79_vm0, %v67_v56, 0  ;;  %v68_v62 = vld [vmem:[%s2732_s1 + $0x15] sm:$0x1]  ;;  %v73_v0 = vld [vmem:[%s2732_s1 + $0x1a] sm:$0x1] }
  0x14   :  { %283 = vmatpush.bf16.xpose.msra.mxu2 %v274_v22  ;;  %302 = vmatpush.bf16.xpose.msra.mxu3 %v293_v23  ;;  %v483_v63 = vsel %vm79_vm0, %v68_v62, 0  ;;  %v74_v1 = vld [vmem:[%s2732_s1 + $0x1b] sm:$0x1]  ;;  %v31_v2 = vld [vmem:[%s2733_s0 + $0x10] sm:$0x1]  ;;  %v578_v7 = vsel %vm79_vm0, %v73_v0, 0 }
  0x15   :  { %v32_v3 = vld [vmem:[%s2733_s0 + $0x11] sm:$0x1]  ;;  %v71_v4 = vld [vmem:[%s2732_s1 + $0x18] sm:$0x1]  ;;  %v33_v5 = vld [vmem:[%s2733_s0 + $0x12] sm:$0x1] }
  0x16   :  { %v34_v6 = vld [vmem:[%s2733_s0 + $0x13] sm:$0x1]  ;;  %v597_v8 = vsel %vm79_vm0, %v74_v1, 0  ;;  %v540_v9 = vsel %vm79_vm0, %v71_v4, 0  ;;  %v72_v10 = vld [vmem:[%s2732_s1 + $0x19] sm:$0x1] }
  0x17   :  { %v559_v11 = vsel %vm79_vm0, %v72_v10, 0  ;;  %v77_v12 = vld [vmem:[%s2732_s1 + $0x1e] sm:$0x1]  ;;  %v78_v13 = vld [vmem:[%s2732_s1 + $0x1f] sm:$0x1] }
  0x18   :  { %v35_v14 = vld [vmem:[%s2733_s0 + $0x14] sm:$0x1]  ;;  %v36_v15 = vld [vmem:[%s2733_s0 + $0x15] sm:$0x1]  ;;  %v75_v16 = vld [vmem:[%s2732_s1 + $0x1c] sm:$0x1] }
  0x19   :  { %v37_v17 = vld [vmem:[%s2733_s0 + $0x16] sm:$0x1]  ;;  %v38_v18 = vld [vmem:[%s2733_s0 + $0x17] sm:$0x1]  ;;  %v654_v19 = vsel %vm79_vm0, %v77_v12, 0  ;;  %v673_v20 = vsel %vm79_vm0, %v78_v13, 0 }
  0x1a   :  { %1788 = vmatmul.msk.bf16.vlgmr.msrb.gmra.mxu0 %vm79_vm0, %v19_v30  ;;  %1789 = vmatmul.msk.bf16.vlgmr.msrb.gmra.mxu1 %vm79_vm0, %v20_v31  ;;  %v616_v21 = vsel %vm79_vm0, %v75_v16, 0  ;;  %v76_v22 = vld [vmem:[%s2732_s1 + $0x1d] sm:$0x1]  ;;  %v39_v24 = vld [vmem:[%s2733_s0 + $0x18] sm:$0x1] }
  0x1b   :  { %321 = vmatpush.bf16.xpose.msrb.mxu0 %v312_v37  ;;  %340 = vmatpush.bf16.xpose.msrb.mxu1 %v331_v39  ;;  %v635_v23 = vsel %vm79_vm0, %v76_v22, 0  ;;  %v40_v25 = vld [vmem:[%s2733_s0 + $0x19] sm:$0x1]  ;;  %v41_v26 = vld [vmem:[%s2733_s0 + $0x1a] sm:$0x1] }
  0x1c   :  { %v42_v27 = vld [vmem:[%s2733_s0 + $0x1b] sm:$0x1]  ;;  %v43_v28 = vld [vmem:[%s2733_s0 + $0x1c] sm:$0x1]  ;;  %v44_v29 = vld [vmem:[%s2733_s0 + $0x1d] sm:$0x1] }
  0x1d   :  { %1790 = vmatmul.msk.bf16.vlgmr.msrb.gmra.mxu2 %vm79_vm0, %v21_v33  ;;  %1791 = vmatmul.msk.bf16.vlgmr.msrb.gmra.mxu3 %vm79_vm0, %v22_v34  ;;  %v45_v30 = vld [vmem:[%s2733_s0 + $0x1e] sm:$0x1]  ;;  %v46_v31 = vld [vmem:[%s2733_s0 + $0x1f] sm:$0x1] }
  0x1e   :  { %359 = vmatpush.bf16.xpose.msrb.mxu2 %v350_v35  ;;  %378 = vmatpush.bf16.xpose.msrb.mxu3 %v369_v36 }
  0x2a   :  { %1792 = vmatmul.msk.bf16.vlgmr.msra.gmra.mxu0 %vm79_vm0, %v23_v42  ;;  %1793 = vmatmul.msk.bf16.vlgmr.msra.gmra.mxu1 %vm79_vm0, %v24_v43 }
  0x2b   :  { %397 = vmatpush.bf16.xpose.msra.mxu0 %v388_v49  ;;  %416 = vmatpush.bf16.xpose.msra.mxu1 %v407_v51 }
  0x2d   :  { %1794 = vmatmul.msk.bf16.vlgmr.msra.gmra.mxu2 %vm79_vm0, %v25_v45  ;;  %1795 = vmatmul.msk.bf16.vlgmr.msra.gmra.mxu3 %vm79_vm0, %v26_v46 }
  0x2e   :  { %435 = vmatpush.bf16.xpose.msra.mxu2 %v426_v47  ;;  %454 = vmatpush.bf16.xpose.msra.mxu3 %v445_v48 }
  0x3a   :  { %1796 = vmatmul.msk.bf16.vlgmr.msrb.gmra.mxu0 %vm79_vm0, %v27_v54  ;;  %1797 = vmatmul.msk.bf16.vlgmr.msrb.gmra.mxu1 %vm79_vm0, %v28_v55 }
  0x3b   :  { %473 = vmatpush.bf16.xpose.msrb.mxu0 %v464_v61  ;;  %492 = vmatpush.bf16.xpose.msrb.mxu1 %v483_v63 }
  0x3d   :  { %1798 = vmatmul.msk.bf16.vlgmr.msrb.gmra.mxu2 %vm79_vm0, %v29_v57  ;;  %1799 = vmatmul.msk.bf16.vlgmr.msrb.gmra.mxu3 %vm79_vm0, %v30_v58 }
  0x3e   :  { %511 = vmatpush.bf16.xpose.msrb.mxu2 %v502_v59  ;;  %530 = vmatpush.bf16.xpose.msrb.mxu3 %v521_v60 }
  0x4a   :  { %1800 = vmatmul.msk.bf16.vlgmr.msra.gmra.mxu0 %vm79_vm0, %v31_v2  ;;  %1801 = vmatmul.msk.bf16.vlgmr.msra.gmra.mxu1 %vm79_vm0, %v32_v3 }
  0x4b   :  { %549 = vmatpush.bf16.xpose.msra.mxu0 %v540_v9  ;;  %568 = vmatpush.bf16.xpose.msra.mxu1 %v559_v11 }
  0x4d   :  { %1802 = vmatmul.msk.bf16.vlgmr.msra.gmra.mxu2 %vm79_vm0, %v33_v5  ;;  %1803 = vmatmul.msk.bf16.vlgmr.msra.gmra.mxu3 %vm79_vm0, %v34_v6 }
  0x4e   :  { %587 = vmatpush.bf16.xpose.msra.mxu2 %v578_v7  ;;  %606 = vmatpush.bf16.xpose.msra.mxu3 %v597_v8 }
  0x5a   :  { %1804 = vmatmul.msk.bf16.vlgmr.msrb.gmra.mxu0 %vm79_vm0, %v35_v14  ;;  %1805 = vmatmul.msk.bf16.vlgmr.msrb.gmra.mxu1 %vm79_vm0, %v36_v15 }
  0x5b   :  { %625 = vmatpush.bf16.xpose.msrb.mxu0 %v616_v21  ;;  %644 = vmatpush.bf16.xpose.msrb.mxu1 %v635_v23 }
  0x5d   :  { %1806 = vmatmul.msk.bf16.vlgmr.msrb.gmra.mxu2 %vm79_vm0, %v37_v17  ;;  %1807 = vmatmul.msk.bf16.vlgmr.msrb.gmra.mxu3 %vm79_vm0, %v38_v18 }
  0x5e   :  { %663 = vmatpush.bf16.xpose.msrb.mxu2 %v654_v19  ;;  %682 = vmatpush.bf16.xpose.msrb.mxu3 %v673_v20 }
  0x6a   :  { %1808 = vmatmul.msk.bf16.vlgmr.msra.gmra.mxu0 %vm79_vm0, %v39_v24  ;;  %1809 = vmatmul.msk.bf16.vlgmr.msra.gmra.mxu1 %vm79_vm0, %v40_v25 }
  0x6d   :  { %1810 = vmatmul.msk.bf16.vlgmr.msra.gmra.mxu2 %vm79_vm0, %v41_v26  ;;  %1811 = vmatmul.msk.bf16.vlgmr.msra.gmra.mxu3 %vm79_vm0, %v42_v27 }
  0x7a   :  { %1812 = vmatmul.msk.bf16.vlgmr.msrb.gmra.mxu0 %vm79_vm0, %v43_v28  ;;  %1813 = vmatmul.msk.bf16.vlgmr.msrb.gmra.mxu1 %vm79_vm0, %v44_v29 }
  0x7d   :  { %1814 = vmatmul.msk.bf16.vlgmr.msrb.gmra.mxu2 %vm79_vm0, %v45_v30  ;;  %1815 = vmatmul.msk.bf16.vlgmr.msrb.gmra.mxu3 %vm79_vm0, %v46_v31 }
  0x87   :  { %v2252_v32 = vpop.f32.mrf.mxu0  ;;  %v2254_v33 = vpop.f32.mrf.mxu1 }
  0x88   :  { %v689_v34 = vsel %vm688_vm1, %v2252_v32, -inf  ;;  %v692_v37 = vsel %vm688_vm1, %v2254_v33, -inf }
  0x89   :  { %690 = vmax.xlane.f32.xlu1 %v689_v34 }
  0x8f   :  { %v97_v39 = vpop.f32.mrf.mxu0  ;;  %v116_v40 = vpop.f32.mrf.mxu1 }
  0x90   :  { %v2258_v35 = vpop.f32.mrf.mxu2  ;;  %v2260_v36 = vpop.f32.mrf.mxu3 }
  0x91   :  { %v695_v38 = vsel %vm688_vm1, %v2258_v35, -inf  ;;  %693 = vmax.xlane.f32.xlu1 %v692_v37  ;;  %v698_v41 = vsel %vm688_vm1, %v2260_v36, -inf }
  0x92   :  { %696 = vmax.xlane.f32.xlu0 %v695_v38 }
  0x97   :  { %v2268_v44 = vpop.f32.mrf.mxu0  ;;  %v2270_v45 = vpop.f32.mrf.mxu1 }
  0x98   :  { %v135_v42 = vpop.f32.mrf.mxu2  ;;  %v154_v43 = vpop.f32.mrf.mxu3  ;;  %v704_v46 = vsel %vm688_vm1, %v2270_v45, -inf  ;;  %v701_v47 = vsel %vm688_vm1, %v2268_v44, -inf }
  0x99   :  { %705 = vmax.xlane.f32.xlu1 %v704_v46 }
  0x9a   :  { %699 = vmax.xlane.f32.xlu0 %v698_v41 }
  0x9f   :  { %v173_v51 = vpop.f32.mrf.mxu0  ;;  %v192_v52 = vpop.f32.mrf.mxu1 }
  0xa0   :  { %v2276_v48 = vpop.f32.mrf.mxu2  ;;  %v2278_v49 = vpop.f32.mrf.mxu3  ;;  %v1011_v52 = vld [vmem:[%s2734_s2 + $0x2] sm:$0x1] }
  0xa1   :  { %v707_v50 = vsel %vm688_vm1, %v2276_v48, -inf  ;;  %v710_v53 = vsel %vm688_vm1, %v2278_v49, -inf }
  0xa2   :  { %708 = vmax.xlane.f32.xlu2 %v707_v50  ;;  %702 = vmax.xlane.f32.xlu0 %v701_v47  ;;  %v1009_v50 = vld [vmem:[%s2734_s2] sm:$0x1] }
  0xa3   :  { %v1047_v51 = vsel %vm1045_vm2, %v1009_v50, 0 }
  0xa4   :  { %1056 = vmatpush.bf16.msra.mxu0 %v1047_v51 }
  0xa7   :  { %v2284_v56 = vpop.f32.mrf.mxu0  ;;  %v2286_v57 = vpop.f32.mrf.mxu1 }
  0xa8   :  { %v211_v54 = vpop.f32.mrf.mxu2  ;;  %v230_v55 = vpop.f32.mrf.mxu3  ;;  %v713_v58 = vsel %vm688_vm1, %v2284_v56, -inf  ;;  %v716_v1 = vsel %vm688_vm1, %v2286_v57, -inf }
  0xa9   :  { %714 = vmax.xlane.f32.xlu1 %v713_v58  ;;  %v1085_v58 = vsel %vm1045_vm2, %v1011_v52, 0 }
  0xaa   :  { %711 = vmax.xlane.f32.xlu2 %v710_v53  ;;  %1094 = vmatpush.bf16.msra.mxu2 %v1085_v58 }
  0xaf   :  { %v249_v63 = vpop.f32.mrf.mxu0  ;;  %v268_v0 = vpop.f32.mrf.mxu1 }
  0xb0   :  { %v2290_v59 = vpop.f32.mrf.mxu2  ;;  %v2292_v60 = vpop.f32.mrf.mxu3 }
  0xb1   :  { %v719_v61 = vsel %vm688_vm1, %v2290_v59, -inf  ;;  %v722_v62 = vsel %vm688_vm1, %v2292_v60, -inf }
  0xb2   :  { %720 = vmax.xlane.f32.xlu2 %v719_v61  ;;  %723 = vmax.xlane.f32.xlu0 %v722_v62 }
  0xb7   :  { %v2300_v4 = vpop.f32.mrf.mxu0  ;;  %v2302_v5 = vpop.f32.mrf.mxu1 }
  0xb8   :  { %v287_v2 = vpop.f32.mrf.mxu2  ;;  %v306_v3 = vpop.f32.mrf.mxu3  ;;  %v725_v8 = vsel %vm688_vm1, %v2300_v4, -inf  ;;  %v728_v13 = vsel %vm688_vm1, %v2302_v5, -inf }
  0xb9   :  { %v1012_v2 = vld [vmem:[%s2734_s2 + $0x3] sm:$0x1] }
  0xba   :  { %717 = vmax.xlane.f32.xlu2 %v716_v1  ;;  %v1010_v1 = vld [vmem:[%s2734_s2 + $0x1] sm:$0x1] }
  0xbb   :  { %v1066_v3 = vsel %vm1045_vm2, %v1010_v1, 0 }
  0xbc   :  { %1075 = vmatpush.bf16.msra.mxu1 %v1066_v3 }
  0xbf   :  { %v325_v11 = vpop.f32.mrf.mxu0  ;;  %v344_v12 = vpop.f32.mrf.mxu1 }
  0xc0   :  { %v2304_v6 = vpop.f32.mrf.mxu2  ;;  %v2306_v7 = vpop.f32.mrf.mxu3 }
  0xc1   :  { %v731_v9 = vsel %vm688_vm1, %v2304_v6, -inf  ;;  %v734_v10 = vsel %vm688_vm1, %v2306_v7, -inf }
  0xc2   :  { %732 = vmax.xlane.f32.xlu0 %v731_v9  ;;  %735 = vmax.xlane.f32.xlu1 %v734_v10 }
  0xc3   :  { %726 = vmax.xlane.f32.xlu2 %v725_v8  ;;  %v1104_v8 = vsel %vm1045_vm2, %v1012_v2, 0 }
  0xc4   :  { %1113 = vmatpush.bf16.msra.mxu3 %v1104_v8 }
  0xc7   :  { %v2316_v16 = vpop.f32.mrf.mxu0  ;;  %v2318_v17 = vpop.f32.mrf.mxu1 }
  0xc8   :  { %v363_v14 = vpop.f32.mrf.mxu2  ;;  %v382_v15 = vpop.f32.mrf.mxu3  ;;  %v737_v20 = vsel %vm688_vm1, %v2316_v16, -inf  ;;  %v740_v25 = vsel %vm688_vm1, %v2318_v17, -inf }
  0xca   :  { %729 = vmax.xlane.f32.xlu0 %v728_v13 }
  0xcf   :  { %v401_v23 = vpop.f32.mrf.mxu0  ;;  %v420_v24 = vpop.f32.mrf.mxu1 }
  0xd0   :  { %v2320_v18 = vpop.f32.mrf.mxu2  ;;  %v2322_v19 = vpop.f32.mrf.mxu3 }
  0xd1   :  { %v743_v21 = vsel %vm688_vm1, %v2320_v18, -inf  ;;  %v746_v22 = vsel %vm688_vm1, %v2322_v19, -inf }
  0xd2   :  { %744 = vmax.xlane.f32.xlu1 %v743_v21  ;;  %747 = vmax.xlane.f32.xlu2 %v746_v22  ;;  %v1013_v21 = vld [vmem:[%s2734_s2 + $0x4] sm:$0x1] }
  0xd3   :  { %738 = vmax.xlane.f32.xlu0 %v737_v20  ;;  %v1015_v20 = vld [vmem:[%s2734_s2 + $0x6] sm:$0x1] }
  0xd7   :  { %v2332_v28 = vpop.f32.mrf.mxu0  ;;  %v2334_v29 = vpop.f32.mrf.mxu1 }
  0xd8   :  { %v439_v26 = vpop.f32.mrf.mxu2  ;;  %v458_v27 = vpop.f32.mrf.mxu3  ;;  %v749_v34 = vsel %vm688_vm1, %v2332_v28, -inf  ;;  %v752_v41 = vsel %vm688_vm1, %v2334_v29, -inf }
  0xd9   :  { %v1123_v26 = vsel %vm1045_vm2, %v1013_v21, 0 }
  0xda   :  { %741 = vmax.xlane.f32.xlu1 %v740_v25  ;;  %v1161_v25 = vsel %vm1045_vm2, %v1015_v20, 0  ;;  %1132 = vmatpush.bf16.msrb.mxu0 %v1123_v26 }
  0xdb   :  { %1170 = vmatpush.bf16.msrb.mxu2 %v1161_v25 }
  0xdf   :  { %v477_v39 = vpop.f32.mrf.mxu0  ;;  %v496_v40 = vpop.f32.mrf.mxu1 }
  0xe0   :  { %v2336_v30 = vpop.f32.mrf.mxu2  ;;  %v2338_v31 = vpop.f32.mrf.mxu3  ;;  %v1014_v39 = vld [vmem:[%s2734_s2 + $0x5] sm:$0x1]  ;;  %v1016_v40 = vld [vmem:[%s2734_s2 + $0x7] sm:$0x1] }
  0xe1   :  { %v755_v37 = vsel %vm688_vm1, %v2336_v30, -inf  ;;  %v758_v38 = vsel %vm688_vm1, %v2338_v31, -inf }
  0xe2   :  { %756 = vmax.xlane.f32.xlu2 %v755_v37  ;;  %759 = vmax.xlane.f32.xlu0 %v758_v38 }
  0xe3   :  { %750 = vmax.xlane.f32.xlu1 %v749_v34 }
  0xe7   :  { %v2348_v46 = vpop.f32.mrf.mxu0  ;;  %v2350_v47 = vpop.f32.mrf.mxu1 }
  0xe8   :  { %v515_v42 = vpop.f32.mrf.mxu2  ;;  %v534_v43 = vpop.f32.mrf.mxu3  ;;  %v761_v55 = vsel %vm688_vm1, %v2348_v46, -inf  ;;  %v764_v9 = vsel %vm688_vm1, %v2350_v47, -inf }
  0xe9   :  { %v1180_v42 = vsel %vm1045_vm2, %v1016_v40, 0 }
  0xea   :  { %753 = vmax.xlane.f32.xlu2 %v752_v41  ;;  %v1142_v41 = vsel %vm1045_vm2, %v1014_v39, 0  ;;  %1189 = vmatpush.bf16.msrb.mxu3 %v1180_v42  ;;  %v1018_v39 = vld [vmem:[%s2734_s2 + $0x9] sm:$0x1] }
  0xeb   :  { %1151 = vmatpush.bf16.msrb.mxu1 %v1142_v41 }
  0xef   :  { %v553_v63 = vpop.f32.mrf.mxu0  ;;  %v572_v0 = vpop.f32.mrf.mxu1 }
  0xf0   :  { %v2359_v53 = vpop.f32.mrf.mxu2  ;;  %v2361_v54 = vpop.f32.mrf.mxu3 }
  0xf1   :  { %v767_v61 = vsel %vm688_vm1, %v2359_v53, -inf  ;;  %v770_v62 = vsel %vm688_vm1, %v2361_v54, -inf }
  0xf2   :  { %768 = vmax.xlane.f32.xlu0 %v767_v61  ;;  %771 = vmax.xlane.f32.xlu1 %v770_v62 }
  0xf3   :  { %762 = vmax.xlane.f32.xlu2 %v761_v55 }
  0xf7   :  { %v2380_v12 = vpop.f32.mrf.mxu0  ;;  %v2382_v13 = vpop.f32.mrf.mxu1 }
  0xf8   :  { %v591_v10 = vpop.f32.mrf.mxu2  ;;  %v610_v11 = vpop.f32.mrf.mxu3  ;;  %v773_v24 = vsel %vm688_vm1, %v2380_v12, -inf  ;;  %v776_v55 = vsel %vm688_vm1, %v2382_v13, -inf }
  0xf9   :  { %v1017_v10 = vld [vmem:[%s2734_s2 + $0x8] sm:$0x1] }
  0xfa   :  { %765 = vmax.xlane.f32.xlu0 %v764_v9  ;;  %v1019_v9 = vld [vmem:[%s2734_s2 + $0xa] sm:$0x1] }
  0xfb   :  { %v1237_v25 = vsel %vm1045_vm2, %v1019_v9, 0 }
  0xfc   :  { %v691_v14 = vpop.xlane.xlu1 %690 }
  0xfd   :  { %v785_v15 = vsub.f32 %v2252_v32, %v691_v14 }
  0xff   :  { %v817_v32 = vmul.f32 1.442695, %v785_v15  ;;  %v629_v37 = vpop.f32.mrf.mxu0  ;;  %v648_v38 = vpop.f32.mrf.mxu1  ;;  %v1199_v15 = vsel %vm1045_vm2, %v1017_v10, 0 }
 0x100   :  { %v2391_v22 = vpop.f32.mrf.mxu2  ;;  %v2393_v23 = vpop.f32.mrf.mxu3  ;;  %v1020_v38 = vld [vmem:[%s2734_s2 + $0xb] sm:$0x1] }
 0x101   :  { %v779_v27 = vsel %vm688_vm1, %v2391_v22, -inf  ;;  %v782_v34 = vsel %vm688_vm1, %v2393_v23, -inf  ;;  %1848 = vpow2.f32 %v817_v32 }
 0x102   :  { %780 = vmax.xlane.f32.xlu1 %v779_v27  ;;  %783 = vmax.xlane.f32.xlu2 %v782_v34 }
 0x103   :  { %774 = vmax.xlane.f32.xlu0 %v773_v24 }
 0x104   :  { %v694_v51 = vpop.xlane.xlu1 %693 }
 0x105   :  { %v697_v43 = vpop.xlane.xlu0 %696  ;;  %v786_v52 = vsub.f32 %v2254_v33, %v694_v51 }
 0x106   :  { %v787_v50 = vsub.f32 %v2258_v35, %v697_v43  ;;  %v1218_v43 = vsel %vm1045_vm2, %v1018_v39, 0 }
 0x107   :  { %v1849_v63 = vpop.eup %1848  ;;  %v819_v0 = vmul.f32 1.442695, %v786_v52 }
 0x108   :  { %v821_v58 = vmul.f32 1.442695, %v787_v50  ;;  %v667_v61 = vpop.f32.mrf.mxu2  ;;  %v686_v62 = vpop.f32.mrf.mxu3  ;;  %v977_v1 = vpack.c.bf16 %v1849_v63, %v1849_v63  ;;  %v881_v2 = vsel %vm688_vm1, %v1849_v63, 0.0 }
 0x10a   :  { %1850 = vpow2.f32 %v821_v58  ;;  %777 = vmax.xlane.f32.xlu1 %v776_v55  ;;  %882 = vadd.xlane.f32.xlu2 %v881_v2  ;;  %v1023_v2 = vld [vmem:[%s2734_s2 + $0xe] sm:$0x1] }
 0x10b   :  { %1852 = vpow2.f32 %v819_v0  ;;  %1816 = vmatmul.msk.bf16.vlgmr.msra.gmra.mxu0 %vm1041_vm3, %v977_v1 }
 0x10c   :  { %v706_v3 = vpop.xlane.xlu1 %705  ;;  %1208 = vmatpush.bf16.msra.mxu0 %v1199_v15 }
 0x10d   :  { %v700_v35 = vpop.xlane.xlu0 %699  ;;  %v790_v8 = vsub.f32 %v2270_v45, %v706_v3 }
 0x10e   :  { %v788_v33 = vsub.f32 %v2260_v36, %v700_v35  ;;  %v1021_v35 = vld [vmem:[%s2734_s2 + $0xc] sm:$0x1] }
 0x10f   :  { %v827_v24 = vmul.f32 1.442695, %v790_v8 }
 0x110   :  { %v1851_v11 = vpop.eup %1850  ;;  %v823_v14 = vmul.f32 1.442695, %v788_v33 }
 0x111   :  { %v1853_v20 = vpop.eup %1852  ;;  %v979_v21 = vpack.c.bf16 %v1851_v11, %v1851_v11  ;;  %v887_v36 = vsel %vm688_vm1, %v1851_v11, 0.0  ;;  %v1275_v11 = vsel %vm1045_vm2, %v1021_v35, 0 }
 0x112   :  { %v978_v45 = vpack.c.bf16 %v1853_v20, %v1853_v20  ;;  %1854 = vpow2.f32 %v823_v14  ;;  %888 = vadd.xlane.f32.xlu1 %v887_v36  ;;  %v884_v26 = vsel %vm688_vm1, %v1853_v20, 0.0 }
 0x113   :  { %1856 = vpow2.f32 %v827_v24  ;;  %1818 = vmatmul.msk.bf16.vlgmr.msra.gmra.mxu2 %vm1041_vm3, %v979_v21  ;;  %885 = vadd.xlane.f32.xlu0 %v884_v26  ;;  %v1024_v24 = vld [vmem:[%s2734_s2 + $0xf] sm:$0x1]  ;;  %v1022_v26 = vld [vmem:[%s2734_s2 + $0xd] sm:$0x1] }
 0x114   :  { %1817 = vmatmul.msk.bf16.vlgmr.msra.gmra.mxu1 %vm1041_vm3, %v978_v45  ;;  %1246 = vmatpush.bf16.msra.mxu2 %v1237_v25 }
 0x115   :  { %v709_v32 = vpop.xlane.xlu2 %708  ;;  %v703_v27 = vpop.xlane.xlu0 %702  ;;  %1227 = vmatpush.bf16.msra.mxu1 %v1218_v43  ;;  %v1025_v43 = vld [vmem:[%s2734_s2 + $0x10] sm:$0x1] }
 0x116   :  { %v791_v34 = vsub.f32 %v2276_v48, %v709_v32  ;;  %v789_v37 = vsub.f32 %v2268_v44, %v703_v27  ;;  %v1256_v48 = vsel %vm1045_vm2, %v1020_v38, 0 }
 0x118   :  { %v1855_v40 = vpop.eup %1854  ;;  %v829_v41 = vmul.f32 1.442695, %v791_v34  ;;  %v825_v42 = vmul.f32 1.442695, %v789_v37  ;;  %v1332_v37 = vsel %vm1045_vm2, %v1024_v24, 0 }
 0x119   :  { %v1857_v50 = vpop.eup %1856  ;;  %v980_v51 = vpack.c.bf16 %v1855_v40, %v1855_v40  ;;  %v890_v52 = vsel %vm688_vm1, %v1855_v40, 0.0 }
 0x11a   :  { %1858 = vpow2.f32 %v829_v41  ;;  %891 = vadd.xlane.f32.xlu2 %v890_v52  ;;  %v896_v44 = vsel %vm688_vm1, %v1857_v50, 0.0  ;;  %v982_v0 = vpack.c.bf16 %v1857_v50, %v1857_v50 }
 0x11b   :  { %1860 = vpow2.f32 %v825_v42  ;;  %1819 = vmatmul.msk.bf16.vlgmr.msra.gmra.mxu3 %vm1041_vm3, %v980_v51  ;;  %897 = vadd.xlane.f32.xlu1 %v896_v44  ;;  %v1027_v42 = vld [vmem:[%s2734_s2 + $0x12] sm:$0x1] }
 0x11c   :  { %1265 = vmatpush.bf16.msra.mxu3 %v1256_v48  ;;  %v715_v61 = vpop.xlane.xlu1 %714  ;;  %v1389_v44 = vsel %vm1045_vm2, %v1027_v42, 0 }
 0x11d   :  { %v712_v55 = vpop.xlane.xlu2 %711  ;;  %v793_v62 = vsub.f32 %v2284_v56, %v715_v61 }
 0x11e   :  { %v792_v58 = vsub.f32 %v2278_v49, %v712_v55  ;;  %v1313_v49 = vsel %vm1045_vm2, %v1023_v2, 0 }
 0x11f   :  { %v833_v8 = vmul.f32 1.442695, %v793_v62  ;;  %v1028_v62 = vld [vmem:[%s2734_s2 + $0x13] sm:$0x1] }
 0x120   :  { %v1859_v63 = vpop.eup %1858  ;;  %v831_v1 = vmul.f32 1.442695, %v792_v58 }
 0x121   :  { %v1861_v33 = vpop.eup %1860  ;;  %v983_v3 = vpack.c.bf16 %v1859_v63, %v1859_v63  ;;  %v899_v9 = vsel %vm688_vm1, %v1859_v63, 0.0 }
 0x122   :  { %v981_v10 = vpack.c.bf16 %v1861_v33, %v1861_v33  ;;  %1862 = vpow2.f32 %v831_v1  ;;  %900 = vadd.xlane.f32.xlu2 %v899_v9  ;;  %v893_v56 = vsel %vm688_vm1, %v1861_v33, 0.0  ;;  %v1026_v9 = vld [vmem:[%s2734_s2 + $0x11] sm:$0x1] }
 0x123   :  { %1864 = vpow2.f32 %v833_v8  ;;  %894 = vadd.xlane.f32.xlu0 %v893_v56  ;;  %1822 = vmatmul.msk.bf16.vlgmr.msrb.gmra.mxu2 %vm1041_vm3, %v983_v3  ;;  %v1408_v8 = vsel %vm1045_vm2, %v1028_v62, 0  ;;  %v1035_v62 = vld [vmem:[%s2734_s2 + $0x1a] sm:$0x1] }
 0x124   :  { %1820 = vmatmul.msk.bf16.vlgmr.msrb.gmra.mxu0 %vm1041_vm3, %v981_v10  ;;  %1821 = vmatmul.msk.bf16.vlgmr.msrb.gmra.mxu1 %vm1041_vm3, %v982_v0 }
 0x125   :  { %v721_v14 = vpop.xlane.xlu2 %720  ;;  %v724_v15 = vpop.xlane.xlu0 %723  ;;  %1322 = vmatpush.bf16.msrb.mxu2 %v1313_v49  ;;  %1284 = vmatpush.bf16.msrb.mxu0 %v1275_v11 }
 0x126   :  { %v795_v20 = vsub.f32 %v2290_v59, %v721_v14  ;;  %v796_v21 = vsub.f32 %v2292_v60, %v724_v15  ;;  %v1294_v59 = vsel %vm1045_vm2, %v1022_v26, 0 }
 0x127   :  { %1303 = vmatpush.bf16.msrb.mxu1 %v1294_v59 }
 0x128   :  { %v1863_v36 = vpop.eup %1862  ;;  %v837_v25 = vmul.f32 1.442695, %v795_v20  ;;  %v839_v45 = vmul.f32 1.442695, %v796_v21  ;;  %v1031_v20 = vld [vmem:[%s2734_s2 + $0x16] sm:$0x1] }
 0x129   :  { %v1865_v32 = vpop.eup %1864  ;;  %v984_v27 = vpack.c.bf16 %v1863_v36, %v1863_v36  ;;  %v902_v34 = vsel %vm688_vm1, %v1863_v36, 0.0  ;;  %v1029_v21 = vld [vmem:[%s2734_s2 + $0x14] sm:$0x1] }
 0x12a   :  { %1866 = vpow2.f32 %v837_v25  ;;  %v905_v60 = vsel %vm688_vm1, %v1865_v32, 0.0  ;;  %v985_v48 = vpack.c.bf16 %v1865_v32, %v1865_v32  ;;  %v1465_v25 = vsel %vm1045_vm2, %v1031_v20, 0  ;;  %v1034_v20 = vld [vmem:[%s2734_s2 + $0x19] sm:$0x1] }
 0x12b   :  { %1868 = vpow2.f32 %v839_v45  ;;  %903 = vadd.xlane.f32.xlu0 %v902_v34  ;;  %1823 = vmatmul.msk.bf16.vlgmr.msrb.gmra.mxu3 %vm1041_vm3, %v984_v27  ;;  %v1427_v32 = vsel %vm1045_vm2, %v1029_v21, 0 }
 0x12c   :  { %906 = vadd.xlane.f32.xlu1 %v905_v60  ;;  %1341 = vmatpush.bf16.msrb.mxu3 %v1332_v37 }
 0x12d   :  { %v718_v38 = vpop.xlane.xlu2 %717 }
 0x12e   :  { %v794_v39 = vsub.f32 %v2286_v57, %v718_v38  ;;  %v1351_v57 = vsel %vm1045_vm2, %v1025_v43, 0  ;;  %v1032_v38 = vld [vmem:[%s2734_s2 + $0x17] sm:$0x1] }
 0x130   :  { %v1867_v40 = vpop.eup %1866  ;;  %v835_v41 = vmul.f32 1.442695, %v794_v39 }
 0x131   :  { %v1869_v50 = vpop.eup %1868  ;;  %v987_v51 = vpack.c.bf16 %v1867_v40, %v1867_v40  ;;  %v911_v52 = vsel %vm688_vm1, %v1867_v40, 0.0 }
 0x132   :  { %1870 = vpow2.f32 %v835_v41  ;;  %v914_v55 = vsel %vm688_vm1, %v1869_v50, 0.0  ;;  %v988_v33 = vpack.c.bf16 %v1869_v50, %v1869_v50  ;;  %v1030_v50 = vld [vmem:[%s2734_s2 + $0x15] sm:$0x1] }
 0x133   :  { %912 = vadd.xlane.f32.xlu0 %v911_v52  ;;  %1826 = vmatmul.msk.bf16.vlgmr.msra.gmra.mxu2 %vm1041_vm3, %v987_v51 }
 0x134   :  { %1824 = vmatmul.msk.bf16.vlgmr.msra.gmra.mxu0 %vm1041_vm3, %v985_v48  ;;  %915 = vadd.xlane.f32.xlu1 %v914_v55  ;;  %v1484_v48 = vsel %vm1045_vm2, %v1032_v38, 0 }
 0x135   :  { %v733_v58 = vpop.xlane.xlu0 %732  ;;  %v736_v61 = vpop.xlane.xlu1 %735  ;;  %1398 = vmatpush.bf16.msra.mxu2 %v1389_v44  ;;  %1360 = vmatpush.bf16.msra.mxu0 %v1351_v57  ;;  %v1446_v44 = vsel %vm1045_vm2, %v1030_v50, 0 }
 0x136   :  { %v799_v63 = vsub.f32 %v2304_v6, %v733_v58  ;;  %v727_v0 = vpop.xlane.xlu2 %726  ;;  %v800_v1 = vsub.f32 %v2306_v7, %v736_v61  ;;  %v1370_v6 = vsel %vm1045_vm2, %v1026_v9, 0 }
 0x137   :  { %v797_v2 = vsub.f32 %v2300_v4, %v727_v0 }
 0x138   :  { %v1871_v35 = vpop.eup %1870  ;;  %v845_v3 = vmul.f32 1.442695, %v799_v63  ;;  %v847_v7 = vmul.f32 1.442695, %v800_v1  ;;  %v1033_v63 = vld [vmem:[%s2734_s2 + $0x18] sm:$0x1] }
 0x139   :  { %v986_v49 = vpack.c.bf16 %v1871_v35, %v1871_v35  ;;  %v841_v10 = vmul.f32 1.442695, %v797_v2  ;;  %v908_v56 = vsel %vm688_vm1, %v1871_v35, 0.0  ;;  %v1541_v35 = vsel %vm1045_vm2, %v1035_v62, 0 }
 0x13a   :  { %1872 = vpow2.f32 %v845_v3  ;;  %909 = vadd.xlane.f32.xlu2 %v908_v56  ;;  %v1503_v3 = vsel %vm1045_vm2, %v1033_v63, 0 }
 0x13b   :  { %1825 = vmatmul.msk.bf16.vlgmr.msra.gmra.mxu1 %vm1041_vm3, %v986_v49  ;;  %1827 = vmatmul.msk.bf16.vlgmr.msra.gmra.mxu3 %vm1041_vm3, %v988_v33  ;;  %1874 = vpow2.f32 %v841_v10 }
 0x13c   :  { %1417 = vmatpush.bf16.msra.mxu3 %v1408_v8  ;;  %1379 = vmatpush.bf16.msra.mxu1 %v1370_v6  ;;  %1876 = vpow2.f32 %v847_v7  ;;  %v1036_v6 = vld [vmem:[%s2734_s2 + $0x1b] sm:$0x1] }
 0x13d   :  { %v730_v4 = vpop.xlane.xlu0 %729 }
 0x13e   :  { %v798_v11 = vsub.f32 %v2302_v5, %v730_v4 }
 0x140   :  { %v1873_v14 = vpop.eup %1872  ;;  %v843_v15 = vmul.f32 1.442695, %v798_v11 }
 0x141   :  { %v991_v24 = vpack.c.bf16 %v1873_v14, %v1873_v14  ;;  %v923_v36 = vsel %vm688_vm1, %v1873_v14, 0.0  ;;  %v1875_v45 = vpop.eup %1874 }
 0x142   :  { %1878 = vpow2.f32 %v843_v15  ;;  %924 = vadd.xlane.f32.xlu1 %v923_v36  ;;  %v989_v5 = vpack.c.bf16 %v1875_v45, %v1875_v45  ;;  %v917_v26 = vsel %vm688_vm1, %v1875_v45, 0.0  ;;  %v1877_v27 = vpop.eup %1876  ;;  %v1560_v36 = vsel %vm1045_vm2, %v1036_v6, 0 }
 0x143   :  { %1830 = vmatmul.msk.bf16.vlgmr.msrb.gmra.mxu2 %vm1041_vm3, %v991_v24  ;;  %918 = vadd.xlane.f32.xlu2 %v917_v26  ;;  %v992_v42 = vpack.c.bf16 %v1877_v27, %v1877_v27 }
 0x144   :  { %1474 = vmatpush.bf16.msrb.mxu2 %v1465_v25  ;;  %1828 = vmatmul.msk.bf16.vlgmr.msrb.gmra.mxu0 %vm1041_vm3, %v989_v5  ;;  %v1522_v25 = vsel %vm1045_vm2, %v1034_v20, 0 }
 0x145   :  { %v745_v34 = vpop.xlane.xlu1 %744  ;;  %v748_v37 = vpop.xlane.xlu2 %747  ;;  %1436 = vmatpush.bf16.msrb.mxu0 %v1427_v32 }
 0x146   :  { %v803_v59 = vsub.f32 %v2320_v18, %v745_v34  ;;  %v739_v60 = vpop.xlane.xlu0 %738  ;;  %v804_v39 = vsub.f32 %v2322_v19, %v748_v37  ;;  %v1037_v34 = vld [vmem:[%s2734_s2 + $0x1c] sm:$0x1] }
 0x147   :  { %v801_v40 = vsub.f32 %v2316_v16, %v739_v60  ;;  %v926_v16 = vsel %vm688_vm1, %v1877_v27, 0.0  ;;  %v1039_v27 = vld [vmem:[%s2734_s2 + $0x1e] sm:$0x1] }
 0x148   :  { %v1879_v41 = vpop.eup %1878  ;;  %v853_v43 = vmul.f32 1.442695, %v803_v59  ;;  %v855_v19 = vmul.f32 1.442695, %v804_v39  ;;  %v1617_v38 = vsel %vm1045_vm2, %v1039_v27, 0 }
 0x149   :  { %v990_v51 = vpack.c.bf16 %v1879_v41, %v1879_v41  ;;  %v849_v52 = vmul.f32 1.442695, %v801_v40  ;;  %v920_v18 = vsel %vm688_vm1, %v1879_v41, 0.0  ;;  %v1579_v40 = vsel %vm1045_vm2, %v1037_v34, 0 }
 0x14a   :  { %1880 = vpow2.f32 %v853_v43  ;;  %921 = vadd.xlane.f32.xlu0 %v920_v18 }
 0x14b   :  { %1829 = vmatmul.msk.bf16.vlgmr.msrb.gmra.mxu1 %vm1041_vm3, %v990_v51  ;;  %1831 = vmatmul.msk.bf16.vlgmr.msrb.gmra.mxu3 %vm1041_vm3, %v992_v42  ;;  %1882 = vpow2.f32 %v849_v52  ;;  %v1040_v52 = vld [vmem:[%s2734_s2 + $0x1f] sm:$0x1] }
 0x14c   :  { %927 = vadd.xlane.f32.xlu2 %v926_v16  ;;  %1493 = vmatpush.bf16.msrb.mxu3 %v1484_v48  ;;  %1884 = vpow2.f32 %v855_v19 }
 0x14d   :  { %v742_v57 = vpop.xlane.xlu1 %741  ;;  %1455 = vmatpush.bf16.msrb.mxu1 %v1446_v44 }
 0x14e   :  { %v802_v55 = vsub.f32 %v2318_v17, %v742_v57  ;;  %v1038_v57 = vld [vmem:[%s2734_s2 + $0x1d] sm:$0x1] }
 0x14f   :  { %v1598_v62 = vsel %vm1045_vm2, %v1038_v57, 0 }
 0x150   :  { %v1881_v58 = vpop.eup %1880  ;;  %v851_v61 = vmul.f32 1.442695, %v802_v55 }
 0x151   :  { %v995_v0 = vpack.c.bf16 %v1881_v58, %v1881_v58  ;;  %v935_v1 = vsel %vm688_vm1, %v1881_v58, 0.0  ;;  %v1883_v2 = vpop.eup %1882 }
 0x152   :  { %1886 = vpow2.f32 %v851_v61  ;;  %v993_v33 = vpack.c.bf16 %v1883_v2, %v1883_v2  ;;  %v929_v17 = vsel %vm688_vm1, %v1883_v2, 0.0  ;;  %v1885_v8 = vpop.eup %1884  ;;  %v1636_v61 = vsel %vm1045_vm2, %v1040_v52, 0 }
 0x153   :  { %1834 = vmatmul.msk.bf16.vlgmr.msra.gmra.mxu2 %vm1041_vm3, %v995_v0  ;;  %930 = vadd.xlane.f32.xlu0 %v929_v17  ;;  %v996_v14 = vpack.c.bf16 %v1885_v8, %v1885_v8 }
 0x154   :  { %936 = vadd.xlane.f32.xlu2 %v935_v1  ;;  %1832 = vmatmul.msk.bf16.vlgmr.msra.gmra.mxu0 %vm1041_vm3, %v993_v33 }
 0x155   :  { %v757_v9 = vpop.xlane.xlu2 %756  ;;  %v760_v49 = vpop.xlane.xlu0 %759  ;;  %1550 = vmatpush.bf16.msra.mxu2 %v1541_v35  ;;  %1512 = vmatpush.bf16.msra.mxu0 %v1503_v3 }
 0x156   :  { %v807_v10 = vsub.f32 %v2336_v30, %v757_v9  ;;  %v751_v56 = vpop.xlane.xlu1 %750  ;;  %v808_v7 = vsub.f32 %v2338_v31, %v760_v49 }
 0x157   :  { %v805_v4 = vsub.f32 %v2332_v28, %v751_v56  ;;  %v938_v28 = vsel %vm688_vm1, %v1885_v8, 0.0 }
 0x158   :  { %v1887_v11 = vpop.eup %1886  ;;  %v861_v15 = vmul.f32 1.442695, %v807_v10  ;;  %v863_v31 = vmul.f32 1.442695, %v808_v7 }
 0x159   :  { %v994_v21 = vpack.c.bf16 %v1887_v11, %v1887_v11  ;;  %v857_v24 = vmul.f32 1.442695, %v805_v4  ;;  %v932_v30 = vsel %vm688_vm1, %v1887_v11, 0.0 }
 0x15a   :  { %1888 = vpow2.f32 %v861_v15  ;;  %933 = vadd.xlane.f32.xlu1 %v932_v30 }
 0x15b   :  { %1833 = vmatmul.msk.bf16.vlgmr.msra.gmra.mxu1 %vm1041_vm3, %v994_v21  ;;  %1835 = vmatmul.msk.bf16.vlgmr.msra.gmra.mxu3 %vm1041_vm3, %v996_v14  ;;  %1890 = vpow2.f32 %v857_v24 }
 0x15c   :  { %939 = vadd.xlane.f32.xlu0 %v938_v28  ;;  %1569 = vmatpush.bf16.msra.mxu3 %v1560_v36  ;;  %1892 = vpow2.f32 %v863_v31 }
 0x15d   :  { %v754_v45 = vpop.xlane.xlu2 %753  ;;  %1531 = vmatpush.bf16.msra.mxu1 %v1522_v25 }
 0x15e   :  { %v806_v5 = vsub.f32 %v2334_v29, %v754_v45 }
 0x160   :  { %v1889_v26 = vpop.eup %1888  ;;  %v859_v32 = vmul.f32 1.442695, %v806_v5 }
 0x161   :  { %v999_v37 = vpack.c.bf16 %v1889_v26, %v1889_v26  ;;  %v947_v59 = vsel %vm688_vm1, %v1889_v26, 0.0  ;;  %v1891_v60 = vpop.eup %1890 }
 0x162   :  { %1894 = vpow2.f32 %v859_v32  ;;  %v997_v39 = vpack.c.bf16 %v1891_v60, %v1891_v60  ;;  %v941_v29 = vsel %vm688_vm1, %v1891_v60, 0.0  ;;  %v1893_v41 = vpop.eup %1892 }
 0x163   :  { %1838 = vmatmul.msk.bf16.vlgmr.msrb.gmra.mxu2 %vm1041_vm3, %v999_v37  ;;  %942 = vadd.xlane.f32.xlu1 %v941_v29  ;;  %v1000_v44 = vpack.c.bf16 %v1893_v41, %v1893_v41 }
 0x164   :  { %948 = vadd.xlane.f32.xlu0 %v947_v59  ;;  %1836 = vmatmul.msk.bf16.vlgmr.msrb.gmra.mxu0 %vm1041_vm3, %v997_v39 }
 0x165   :  { %v769_v42 = vpop.xlane.xlu0 %768  ;;  %v772_v43 = vpop.xlane.xlu1 %771  ;;  %1626 = vmatpush.bf16.msrb.mxu2 %v1617_v38  ;;  %1588 = vmatpush.bf16.msrb.mxu0 %v1579_v40 }
 0x166   :  { %v811_v50 = vsub.f32 %v2359_v53, %v769_v42  ;;  %v763_v51 = vpop.xlane.xlu2 %762  ;;  %v812_v16 = vsub.f32 %v2361_v54, %v772_v43 }
 0x167   :  { %v809_v18 = vsub.f32 %v2348_v46, %v763_v51  ;;  %v950_v46 = vsel %vm688_vm1, %v1893_v41, 0.0 }
 0x168   :  { %v1895_v48 = vpop.eup %1894  ;;  %v869_v19 = vmul.f32 1.442695, %v811_v50  ;;  %v871_v54 = vmul.f32 1.442695, %v812_v16 }
 0x169   :  { %v998_v55 = vpack.c.bf16 %v1895_v48, %v1895_v48  ;;  %v865_v58 = vmul.f32 1.442695, %v809_v18  ;;  %v944_v53 = vsel %vm688_vm1, %v1895_v48, 0.0 }
 0x16a   :  { %1896 = vpow2.f32 %v869_v19  ;;  %945 = vadd.xlane.f32.xlu2 %v944_v53 }
 0x16b   :  { %1837 = vmatmul.msk.bf16.vlgmr.msrb.gmra.mxu1 %vm1041_vm3, %v998_v55  ;;  %1839 = vmatmul.msk.bf16.vlgmr.msrb.gmra.mxu3 %vm1041_vm3, %v1000_v44  ;;  %1898 = vpow2.f32 %v865_v58 }
 0x16c   :  { %951 = vadd.xlane.f32.xlu1 %v950_v46  ;;  %1645 = vmatpush.bf16.msrb.mxu3 %v1636_v61  ;;  %1900 = vpow2.f32 %v871_v54 }
 0x16d   :  { %v766_v63 = vpop.xlane.xlu0 %765  ;;  %1607 = vmatpush.bf16.msrb.mxu1 %v1598_v62 }
 0x16e   :  { %v810_v0 = vsub.f32 %v2350_v47, %v766_v63 }
 0x170   :  { %v1897_v1 = vpop.eup %1896  ;;  %v867_v2 = vmul.f32 1.442695, %v810_v0 }
 0x171   :  { %v1003_v35 = vpack.c.bf16 %v1897_v1, %v1897_v1  ;;  %v959_v33 = vsel %vm688_vm1, %v1897_v1, 0.0  ;;  %v1899_v17 = vpop.eup %1898 }
 0x172   :  { %1902 = vpow2.f32 %v867_v2  ;;  %v1001_v3 = vpack.c.bf16 %v1899_v17, %v1899_v17  ;;  %v953_v8 = vsel %vm688_vm1, %v1899_v17, 0.0  ;;  %v1901_v47 = vpop.eup %1900 }
 0x173   :  { %1842 = vmatmul.msk.bf16.vlgmr.msra.gmra.mxu2 %vm1041_vm3, %v1003_v35  ;;  %954 = vadd.xlane.f32.xlu2 %v953_v8  ;;  %v1004_v14 = vpack.c.bf16 %v1901_v47, %v1901_v47  ;;  %v962_v24 = vsel %vm688_vm1, %v1901_v47, 0.0 }
 0x174   :  { %960 = vadd.xlane.f32.xlu1 %v959_v33  ;;  %1840 = vmatmul.msk.bf16.vlgmr.msra.gmra.mxu0 %vm1041_vm3, %v1001_v3 }
 0x175   :  { %v781_v9 = vpop.xlane.xlu1 %780  ;;  %v784_v49 = vpop.xlane.xlu2 %783 }
 0x176   :  { %v815_v10 = vsub.f32 %v2391_v22, %v781_v9  ;;  %v775_v56 = vpop.xlane.xlu0 %774  ;;  %v816_v11 = vsub.f32 %v2393_v23, %v784_v49 }
 0x177   :  { %v813_v6 = vsub.f32 %v2380_v12, %v775_v56 }
 0x178   :  { %v1903_v7 = vpop.eup %1902  ;;  %v877_v4 = vmul.f32 1.442695, %v815_v10  ;;  %v879_v22 = vmul.f32 1.442695, %v816_v11 }
 0x179   :  { %v1002_v15 = vpack.c.bf16 %v1903_v7, %v1903_v7  ;;  %v873_v20 = vmul.f32 1.442695, %v813_v6  ;;  %v956_v21 = vsel %vm688_vm1, %v1903_v7, 0.0 }
 0x17a   :  { %1904 = vpow2.f32 %v877_v4  ;;  %957 = vadd.xlane.f32.xlu0 %v956_v21 }
 0x17b   :  { %1841 = vmatmul.msk.bf16.vlgmr.msra.gmra.mxu1 %vm1041_vm3, %v1002_v15  ;;  %1843 = vmatmul.msk.bf16.vlgmr.msra.gmra.mxu3 %vm1041_vm3, %v1004_v14  ;;  %1906 = vpow2.f32 %v873_v20 }
 0x17c   :  { %963 = vadd.xlane.f32.xlu2 %v962_v24  ;;  %1908 = vpow2.f32 %v879_v22 }
 0x17d   :  { %v778_v12 = vpop.xlane.xlu1 %777  ;;  %v883_v25 = vpop.xlane.xlu2 %882 }
 0x17e   :  { %v814_v30 = vsub.f32 %v2382_v13, %v778_v12 }
 0x180   :  { %v1905_v23 = vpop.eup %1904  ;;  %v875_v36 = vmul.f32 1.442695, %v814_v30 }
 0x181   :  { %v1007_v31 = vpack.c.bf16 %v1905_v23, %v1905_v23  ;;  %v971_v28 = vsel %vm688_vm1, %v1905_v23, 0.0  ;;  %v1907_v45 = vpop.eup %1906 }
 0x182   :  { %1910 = vpow2.f32 %v875_v36  ;;  %v1005_v5 = vpack.c.bf16 %v1907_v45, %v1907_v45  ;;  %v965_v26 = vsel %vm688_vm1, %v1907_v45, 0.0  ;;  %v1909_v13 = vpop.eup %1908 }
 0x183   :  { %1912 = vrcp.f32 %v883_v25  ;;  %1846 = vmatmul.msk.bf16.vlgmr.msrb.gmra.mxu2 %vm1041_vm3, %v1007_v31  ;;  %966 = vadd.xlane.f32.xlu0 %v965_v26  ;;  %v1008_v37 = vpack.c.bf16 %v1909_v13, %v1909_v13  ;;  %v974_v29 = vsel %vm688_vm1, %v1909_v13, 0.0 }
 0x184   :  { %972 = vadd.xlane.f32.xlu2 %v971_v28  ;;  %1844 = vmatmul.msk.bf16.vlgmr.msrb.gmra.mxu0 %vm1041_vm3, %v1005_v5 }
 0x185   :  { %v889_v41 = vpop.xlane.xlu1 %888 }
 0x186   :  { %v886_v27 = vpop.xlane.xlu0 %885 }
 0x187   :  { %1914 = vrcp.f32 %v886_v27 }
 0x188   :  { %v1911_v32 = vpop.eup %1910  ;;  %v1058_v38 = vpop.f32.mrf.mxu0  ;;  %1916 = vrcp.f32 %v889_v41 }
 0x189   :  { %v1913_v34 = vpop.eup %1912  ;;  %v1006_v59 = vpack.c.bf16 %v1911_v32, %v1911_v32  ;;  %v968_v60 = vsel %vm688_vm1, %v1911_v32, 0.0 }
 0x18a   :  { %969 = vadd.xlane.f32.xlu1 %v968_v60  ;;  %v1683_v39 = vmul.f32 %v1913_v34, %v1058_v38 }
 0x18b   :  { %1845 = vmatmul.msk.bf16.vlgmr.msrb.gmra.mxu1 %vm1041_vm3, %v1006_v59  ;;  %1847 = vmatmul.msk.bf16.vlgmr.msrb.gmra.mxu3 %vm1041_vm3, %v1008_v37 }
 0x18c   :  { %975 = vadd.xlane.f32.xlu0 %v974_v29  ;;  %v1715_v40 = vpack.c.bf16 %v1683_v39, %v1683_v39 }
 0x18d   :  { %v1915_v42 = vpop.eup %1914  ;;  %v892_v52 = vpop.xlane.xlu2 %891 }
 0x18e   :  { %1748 = vst.msk [vmem:[%s2735_s3] sm:$0x1] %vm1747_vm4, %v1715_v40  ;;  %v1917_v48 = vpop.eup %1916  ;;  %v898_v19 = vpop.xlane.xlu1 %897  ;;  %1918 = vrcp.f32 %v892_v52 }
 0x18f   :  { %1920 = vrcp.f32 %v898_v19 }
 0x190   :  { %v1060_v43 = vpop.f32.mrf.mxu0 }
 0x191   :  { %v1077_v50 = vpop.f32.mrf.mxu1 }
 0x192   :  { %v1684_v51 = vmul.f32 %v1915_v42, %v1077_v50 }
 0x194   :  { %v1716_v18 = vpack.c.bf16 %v1684_v51, %v1684_v51  ;;  %v1919_v62 = vpop.eup %1918 }
 0x195   :  { %v901_v53 = vpop.xlane.xlu2 %900  ;;  %v1921_v54 = vpop.eup %1920 }
 0x196   :  { %1749 = vst.msk [vmem:[%s2735_s3 + $0x1] sm:$0x1] %vm1747_vm4, %v1716_v18  ;;  %v1096_v44 = vpop.f32.mrf.mxu2  ;;  %v895_v57 = vpop.xlane.xlu0 %894 }
 0x197   :  { %v1685_v16 = vmul.f32 %v1917_v48, %v1096_v44  ;;  %1922 = vrcp.f32 %v895_v57 }
 0x198   :  { %1924 = vrcp.f32 %v901_v53 }
 0x199   :  { %v1717_v55 = vpack.c.bf16 %v1685_v16, %v1685_v16  ;;  %v1079_v58 = vpop.f32.mrf.mxu1 }
 0x19b   :  { %1750 = vst.msk [vmem:[%s2735_s3 + $0x2] sm:$0x1] %vm1747_vm4, %v1717_v55 }
 0x19d   :  { %v1923_v0 = vpop.eup %1922 }
 0x19e   :  { %v1098_v61 = vpop.f32.mrf.mxu2  ;;  %v1115_v46 = vpop.f32.mrf.mxu3 }
 0x19f   :  { %v1686_v63 = vmul.f32 %v1919_v62, %v1115_v46  ;;  %v904_v3 = vpop.xlane.xlu0 %903  ;;  %v1925_v49 = vpop.eup %1924 }
 0x1a0   :  { %v907_v6 = vpop.xlane.xlu1 %906  ;;  %1926 = vrcp.f32 %v904_v3 }
 0x1a1   :  { %v1134_v1 = vpop.f32.mrf.mxu0  ;;  %v1153_v2 = vpop.f32.mrf.mxu1  ;;  %v1718_v35 = vpack.c.bf16 %v1686_v63, %v1686_v63  ;;  %1928 = vrcp.f32 %v907_v6 }
 0x1a2   :  { %v1687_v33 = vmul.f32 %v1923_v0, %v1134_v1  ;;  %v1688_v17 = vmul.f32 %v1921_v54, %v1153_v2 }
 0x1a3   :  { %1751 = vst.msk [vmem:[%s2735_s3 + $0x3] sm:$0x1] %vm1747_vm4, %v1718_v35 }
 0x1a4   :  { %v1719_v8 = vpack.c.bf16 %v1687_v33, %v1687_v33  ;;  %v1720_v9 = vpack.c.bf16 %v1688_v17, %v1688_v17 }
 0x1a6   :  { %1752 = vst.msk [vmem:[%s2735_s3 + $0x4] sm:$0x1] %vm1747_vm4, %v1719_v8  ;;  %v1172_v47 = vpop.f32.mrf.mxu2  ;;  %v1117_v10 = vpop.f32.mrf.mxu3 }
 0x1a7   :  { %1753 = vst.msk [vmem:[%s2735_s3 + $0x5] sm:$0x1] %vm1747_vm4, %v1720_v9  ;;  %v1689_v56 = vmul.f32 %v1925_v49, %v1172_v47  ;;  %v913_v14 = vpop.xlane.xlu0 %912  ;;  %v1927_v20 = vpop.eup %1926 }
 0x1a8   :  { %1930 = vrcp.f32 %v913_v14  ;;  %v1929_v12 = vpop.eup %1928  ;;  %v916_v31 = vpop.xlane.xlu1 %915 }
 0x1a9   :  { %v1721_v7 = vpack.c.bf16 %v1689_v56, %v1689_v56  ;;  %v1136_v4 = vpop.f32.mrf.mxu0  ;;  %v1155_v11 = vpop.f32.mrf.mxu1 }
 0x1ab   :  { %1754 = vst.msk [vmem:[%s2735_s3 + $0x6] sm:$0x1] %vm1747_vm4, %v1721_v7 }
 0x1ad   :  { %v910_v21 = vpop.xlane.xlu2 %909 }
 0x1ae   :  { %v1174_v15 = vpop.f32.mrf.mxu2  ;;  %v1191_v24 = vpop.f32.mrf.mxu3  ;;  %1932 = vrcp.f32 %v910_v21 }
 0x1af   :  { %v1690_v22 = vmul.f32 %v1927_v20, %v1191_v24  ;;  %v1931_v28 = vpop.eup %1930  ;;  %1934 = vrcp.f32 %v916_v31 }
 0x1b1   :  { %v1210_v30 = vpop.f32.mrf.mxu0  ;;  %v1722_v23 = vpack.c.bf16 %v1690_v22, %v1690_v22 }
 0x1b2   :  { %v1691_v36 = vmul.f32 %v1929_v12, %v1210_v30 }
 0x1b3   :  { %1755 = vst.msk [vmem:[%s2735_s3 + $0x7] sm:$0x1] %vm1747_vm4, %v1722_v23 }
 0x1b4   :  { %v1723_v25 = vpack.c.bf16 %v1691_v36, %v1691_v36  ;;  %v1933_v13 = vpop.eup %1932 }
 0x1b5   :  { %v925_v38 = vpop.xlane.xlu1 %924  ;;  %v1935_v29 = vpop.eup %1934 }
 0x1b6   :  { %1756 = vst.msk [vmem:[%s2735_s3 + $0x8] sm:$0x1] %vm1747_vm4, %v1723_v25  ;;  %v1248_v45 = vpop.f32.mrf.mxu2  ;;  %v1193_v5 = vpop.f32.mrf.mxu3 }
 0x1b7   :  { %v1693_v26 = vmul.f32 %v1931_v28, %v1248_v45  ;;  %v919_v27 = vpop.xlane.xlu2 %918 }
 0x1b8   :  { %v1229_v32 = vpop.f32.mrf.mxu1  ;;  %1936 = vrcp.f32 %v919_v27 }
 0x1b9   :  { %v1725_v34 = vpack.c.bf16 %v1693_v26, %v1693_v26  ;;  %v1212_v37 = vpop.f32.mrf.mxu0  ;;  %v1692_v59 = vmul.f32 %v1933_v13, %v1229_v32  ;;  %1938 = vrcp.f32 %v925_v38 }
 0x1bb   :  { %1758 = vst.msk [vmem:[%s2735_s3 + $0xa] sm:$0x1] %vm1747_vm4, %v1725_v34  ;;  %v1724_v60 = vpack.c.bf16 %v1692_v59, %v1692_v59 }
 0x1bd   :  { %1757 = vst.msk [vmem:[%s2735_s3 + $0x9] sm:$0x1] %vm1747_vm4, %v1724_v60  ;;  %v922_v40 = vpop.xlane.xlu0 %921 }
 0x1be   :  { %v1250_v39 = vpop.f32.mrf.mxu2  ;;  %v1267_v41 = vpop.f32.mrf.mxu3  ;;  %1940 = vrcp.f32 %v922_v40 }
 0x1bf   :  { %v1694_v42 = vmul.f32 %v1935_v29, %v1267_v41  ;;  %v1937_v50 = vpop.eup %1936  ;;  %v928_v18 = vpop.xlane.xlu2 %927 }
 0x1c0   :  { %v1231_v43 = vpop.f32.mrf.mxu1  ;;  %v1939_v19 = vpop.eup %1938  ;;  %1942 = vrcp.f32 %v928_v18 }
 0x1c1   :  { %v1726_v51 = vpack.c.bf16 %v1694_v42, %v1694_v42  ;;  %v1286_v52 = vpop.f32.mrf.mxu0 }
 0x1c2   :  { %v1695_v48 = vmul.f32 %v1937_v50, %v1286_v52 }
 0x1c3   :  { %1759 = vst.msk [vmem:[%s2735_s3 + $0xb] sm:$0x1] %vm1747_vm4, %v1726_v51 }
 0x1c4   :  { %v1727_v44 = vpack.c.bf16 %v1695_v48, %v1695_v48  ;;  %v1941_v55 = vpop.eup %1940 }
 0x1c6   :  { %v1324_v16 = vpop.f32.mrf.mxu2  ;;  %1760 = vst.msk [vmem:[%s2735_s3 + $0xc] sm:$0x1] %vm1747_vm4, %v1727_v44  ;;  %v1269_v58 = vpop.f32.mrf.mxu3 }
 0x1c7   :  { %v1697_v57 = vmul.f32 %v1939_v19, %v1324_v16  ;;  %v931_v61 = vpop.xlane.xlu0 %930  ;;  %v937_v0 = vpop.xlane.xlu2 %936 }
 0x1c8   :  { %v1305_v53 = vpop.f32.mrf.mxu1  ;;  %1944 = vrcp.f32 %v931_v61  ;;  %v1943_v35 = vpop.eup %1942 }
 0x1c9   :  { %v1729_v62 = vpack.c.bf16 %v1697_v57, %v1697_v57  ;;  %v1696_v46 = vmul.f32 %v1941_v55, %v1305_v53  ;;  %v1288_v54 = vpop.f32.mrf.mxu0  ;;  %1946 = vrcp.f32 %v937_v0 }
 0x1cb   :  { %1762 = vst.msk [vmem:[%s2735_s3 + $0xe] sm:$0x1] %vm1747_vm4, %v1729_v62  ;;  %v1728_v63 = vpack.c.bf16 %v1696_v46, %v1696_v46 }
 0x1cd   :  { %1761 = vst.msk [vmem:[%s2735_s3 + $0xd] sm:$0x1] %vm1747_vm4, %v1728_v63  ;;  %v934_v2 = vpop.xlane.xlu1 %933 }
 0x1ce   :  { %v1326_v1 = vpop.f32.mrf.mxu2  ;;  %v1343_v33 = vpop.f32.mrf.mxu3  ;;  %1948 = vrcp.f32 %v934_v2 }
 0x1cf   :  { %v1698_v3 = vmul.f32 %v1943_v35, %v1343_v33  ;;  %v1945_v8 = vpop.eup %1944  ;;  %v940_v49 = vpop.xlane.xlu0 %939 }
 0x1d0   :  { %v1307_v17 = vpop.f32.mrf.mxu1  ;;  %v1947_v6 = vpop.eup %1946  ;;  %1950 = vrcp.f32 %v940_v49 }
 0x1d1   :  { %v1362_v9 = vpop.f32.mrf.mxu0  ;;  %v1730_v47 = vpack.c.bf16 %v1698_v3, %v1698_v3 }
 0x1d2   :  { %v1699_v10 = vmul.f32 %v1945_v8, %v1362_v9 }
 0x1d3   :  { %1763 = vst.msk [vmem:[%s2735_s3 + $0xf] sm:$0x1] %vm1747_vm4, %v1730_v47 }
 0x1d4   :  { %v1731_v56 = vpack.c.bf16 %v1699_v10, %v1699_v10  ;;  %v1949_v11 = vpop.eup %1948 }
 0x1d6   :  { %v1400_v7 = vpop.f32.mrf.mxu2  ;;  %1764 = vst.msk [vmem:[%s2735_s3 + $0x10] sm:$0x1] %vm1747_vm4, %v1731_v56  ;;  %v1345_v14 = vpop.f32.mrf.mxu3 }
 0x1d7   :  { %v1701_v4 = vmul.f32 %v1947_v6, %v1400_v7  ;;  %v943_v20 = vpop.xlane.xlu1 %942  ;;  %v949_v30 = vpop.xlane.xlu0 %948 }
 0x1d8   :  { %v1381_v15 = vpop.f32.mrf.mxu1  ;;  %1952 = vrcp.f32 %v943_v20  ;;  %v1951_v25 = vpop.eup %1950 }
 0x1d9   :  { %v1733_v21 = vpack.c.bf16 %v1701_v4, %v1701_v4  ;;  %v1700_v24 = vmul.f32 %v1949_v11, %v1381_v15  ;;  %v1364_v22 = vpop.f32.mrf.mxu0  ;;  %1954 = vrcp.f32 %v949_v30 }
 0x1db   :  { %1766 = vst.msk [vmem:[%s2735_s3 + $0x12] sm:$0x1] %vm1747_vm4, %v1733_v21  ;;  %v1732_v12 = vpack.c.bf16 %v1700_v24, %v1700_v24 }
 0x1dd   :  { %1765 = vst.msk [vmem:[%s2735_s3 + $0x11] sm:$0x1] %vm1747_vm4, %v1732_v12  ;;  %v946_v36 = vpop.xlane.xlu2 %945 }
 0x1de   :  { %v1402_v23 = vpop.f32.mrf.mxu2  ;;  %v1419_v31 = vpop.f32.mrf.mxu3  ;;  %1956 = vrcp.f32 %v946_v36 }
 0x1df   :  { %v1702_v45 = vmul.f32 %v1951_v25, %v1419_v31  ;;  %v1953_v5 = vpop.eup %1952  ;;  %v952_v13 = vpop.xlane.xlu1 %951 }
 0x1e0   :  { %v1383_v28 = vpop.f32.mrf.mxu1  ;;  %v1955_v37 = vpop.eup %1954  ;;  %1958 = vrcp.f32 %v952_v13 }
 0x1e1   :  { %v1438_v26 = vpop.f32.mrf.mxu0  ;;  %v1734_v32 = vpack.c.bf16 %v1702_v45, %v1702_v45 }
 0x1e2   :  { %v1703_v27 = vmul.f32 %v1953_v5, %v1438_v26 }
 0x1e3   :  { %1767 = vst.msk [vmem:[%s2735_s3 + $0x13] sm:$0x1] %vm1747_vm4, %v1734_v32 }
 0x1e4   :  { %v1735_v34 = vpack.c.bf16 %v1703_v27, %v1703_v27  ;;  %v1957_v38 = vpop.eup %1956 }
 0x1e6   :  { %v1476_v59 = vpop.f32.mrf.mxu2  ;;  %1768 = vst.msk [vmem:[%s2735_s3 + $0x14] sm:$0x1] %vm1747_vm4, %v1735_v34  ;;  %v1421_v39 = vpop.f32.mrf.mxu3 }
 0x1e7   :  { %v1705_v60 = vmul.f32 %v1955_v37, %v1476_v59  ;;  %v955_v40 = vpop.xlane.xlu2 %954  ;;  %v961_v51 = vpop.xlane.xlu1 %960 }
 0x1e8   :  { %v1457_v29 = vpop.f32.mrf.mxu1  ;;  %1960 = vrcp.f32 %v955_v40  ;;  %v1959_v48 = vpop.eup %1958 }
 0x1e9   :  { %v1737_v41 = vpack.c.bf16 %v1705_v60, %v1705_v60  ;;  %v1704_v42 = vmul.f32 %v1957_v38, %v1457_v29  ;;  %v1440_v43 = vpop.f32.mrf.mxu0  ;;  %1962 = vrcp.f32 %v961_v51 }
 0x1eb   :  { %1770 = vst.msk [vmem:[%s2735_s3 + $0x16] sm:$0x1] %vm1747_vm4, %v1737_v41  ;;  %v1736_v50 = vpack.c.bf16 %v1704_v42, %v1704_v42 }
 0x1ed   :  { %1769 = vst.msk [vmem:[%s2735_s3 + $0x15] sm:$0x1] %vm1747_vm4, %v1736_v50  ;;  %v958_v18 = vpop.xlane.xlu0 %957 }
 0x1ee   :  { %v1478_v52 = vpop.f32.mrf.mxu2  ;;  %v1495_v44 = vpop.f32.mrf.mxu3  ;;  %1964 = vrcp.f32 %v958_v18 }
 0x1ef   :  { %v1706_v16 = vmul.f32 %v1959_v48, %v1495_v44  ;;  %v1961_v57 = vpop.eup %1960  ;;  %v964_v58 = vpop.xlane.xlu2 %963 }
 0x1f0   :  { %v1459_v19 = vpop.f32.mrf.mxu1  ;;  %v1963_v46 = vpop.eup %1962  ;;  %1966 = vrcp.f32 %v964_v58 }
 0x1f1   :  { %v1514_v55 = vpop.f32.mrf.mxu0  ;;  %v1738_v53 = vpack.c.bf16 %v1706_v16, %v1706_v16 }
 0x1f2   :  { %v1707_v61 = vmul.f32 %v1961_v57, %v1514_v55 }
 0x1f3   :  { %1771 = vst.msk [vmem:[%s2735_s3 + $0x17] sm:$0x1] %vm1747_vm4, %v1738_v53 }
 0x1f4   :  { %v1739_v62 = vpack.c.bf16 %v1707_v61, %v1707_v61  ;;  %v1965_v0 = vpop.eup %1964 }
 0x1f6   :  { %v1552_v54 = vpop.f32.mrf.mxu2  ;;  %1772 = vst.msk [vmem:[%s2735_s3 + $0x18] sm:$0x1] %vm1747_vm4, %v1739_v62  ;;  %v1497_v1 = vpop.f32.mrf.mxu3 }
 0x1f7   :  { %v1709_v63 = vmul.f32 %v1963_v46, %v1552_v54  ;;  %v967_v35 = vpop.xlane.xlu0 %966  ;;  %v973_v9 = vpop.xlane.xlu2 %972 }
 0x1f8   :  { %v1533_v2 = vpop.f32.mrf.mxu1  ;;  %1968 = vrcp.f32 %v967_v35  ;;  %v1967_v10 = vpop.eup %1966 }
 0x1f9   :  { %v1741_v33 = vpack.c.bf16 %v1709_v63, %v1709_v63  ;;  %v1708_v17 = vmul.f32 %v1965_v0, %v1533_v2  ;;  %v1516_v3 = vpop.f32.mrf.mxu0  ;;  %1970 = vrcp.f32 %v973_v9 }
 0x1fb   :  { %1774 = vst.msk [vmem:[%s2735_s3 + $0x1a] sm:$0x1] %vm1747_vm4, %v1741_v33  ;;  %v1740_v8 = vpack.c.bf16 %v1708_v17, %v1708_v17 }
 0x1fd   :  { %1773 = vst.msk [vmem:[%s2735_s3 + $0x19] sm:$0x1] %vm1747_vm4, %v1740_v8  ;;  %v970_v47 = vpop.xlane.xlu1 %969 }
 0x1fe   :  { %v1554_v49 = vpop.f32.mrf.mxu2  ;;  %v1571_v56 = vpop.f32.mrf.mxu3  ;;  %1972 = vrcp.f32 %v970_v47 }
 0x1ff   :  { %v1710_v7 = vmul.f32 %v1967_v10, %v1571_v56  ;;  %v1969_v4 = vpop.eup %1968  ;;  %v976_v22 = vpop.xlane.xlu0 %975 }
 0x200   :  { %v1535_v6 = vpop.f32.mrf.mxu1  ;;  %v1971_v21 = vpop.eup %1970  ;;  %1974 = vrcp.f32 %v976_v22 }
 0x201   :  { %v1590_v11 = vpop.f32.mrf.mxu0  ;;  %v1742_v14 = vpack.c.bf16 %v1710_v7, %v1710_v7 }
 0x202   :  { %v1711_v15 = vmul.f32 %v1969_v4, %v1590_v11 }
 0x203   :  { %1775 = vst.msk [vmem:[%s2735_s3 + $0x1b] sm:$0x1] %vm1747_vm4, %v1742_v14 }
 0x204   :  { %v1743_v20 = vpack.c.bf16 %v1711_v15, %v1711_v15  ;;  %v1973_v30 = vpop.eup %1972 }
 0x206   :  { %v1628_v24 = vpop.f32.mrf.mxu2  ;;  %1776 = vst.msk [vmem:[%s2735_s3 + $0x1c] sm:$0x1] %vm1747_vm4, %v1743_v20  ;;  %v1573_v23 = vpop.f32.mrf.mxu3 }
 0x207   :  { %v1713_v12 = vmul.f32 %v1971_v21, %v1628_v24  ;;  %v1975_v26 = vpop.eup %1974 }
 0x208   :  { %v1609_v36 = vpop.f32.mrf.mxu1 }
 0x209   :  { %v1745_v25 = vpack.c.bf16 %v1713_v12, %v1713_v12  ;;  %v1712_v31 = vmul.f32 %v1973_v30, %v1609_v36  ;;  %v1592_v28 = vpop.f32.mrf.mxu0 }
 0x20b   :  { %1778 = vst.msk [vmem:[%s2735_s3 + $0x1e] sm:$0x1] %vm1747_vm4, %v1745_v25  ;;  %v1744_v45 = vpack.c.bf16 %v1712_v31, %v1712_v31 }
 0x20d   :  { %1777 = vst.msk [vmem:[%s2735_s3 + $0x1d] sm:$0x1] %vm1747_vm4, %v1744_v45 }
 0x20e   :  { %v1630_v5 = vpop.f32.mrf.mxu2  ;;  %v1647_v13 = vpop.f32.mrf.mxu3 }
 0x20f   :  { %v1714_v27 = vmul.f32 %v1975_v26, %v1647_v13 }
 0x210   :  { %v1611_v32 = vpop.f32.mrf.mxu1 }
 0x211   :  { %v1746_v34 = vpack.c.bf16 %v1714_v27, %v1714_v27 }
 0x213   :  { %1779 = vst.msk [vmem:[%s2735_s3 + $0x1f] sm:$0x1] %vm1747_vm4, %v1746_v34 }
 0x216   :  { %v1649_v37 = vpop.f32.mrf.mxu3 }

</bundles_post_ra>
